<compile_context>
chip_gen: v5e
topology: v5e:2x2
jax: 0.10.0
libtpu: 0.0.40
codegen_flags: <defaults>
</compile_context>

<pallas_src>
import jax
import jax.numpy as jnp
from jax.experimental import pallas as pl
from jax.experimental.pallas import tpu as pltpu


# ------------------------- Fused LSTM + head kernel ---------------------------

def _make_fused_kernel(num_layers, T, Bp, H):
    """Build the fused (all LSTM layers + MLP head) kernel for static shapes."""
    n_extra = 3 * (num_layers - 1)
    G = 4 * H

    def kernel(*args):
        # Inputs.
        x_ref = args[0]                       # (T*Bp, D)  time-major, batch padded to 8
        wih0_ref = args[1]                    # (D, 4H)    W_ih^T, layer 0
        b0_ref = args[2]                      # (1, 4H)    b_ih + b_hh, layer 0
        whh0_ref = args[3]                    # (H, 4H)    W_hh^T, layer 0
        extra = args[4:4 + n_extra]           # per layer>=1: wih (H,4H), whh (H,4H), b (1,4H)
        wf1_ref, bf1_ref, wf2_ref, bf2_ref = args[4 + n_extra:4 + n_extra + 4]
        out_ref = args[4 + n_extra + 4]       # (Bp, O)
        xp0_sc = args[4 + n_extra + 5]        # (T*Bp, 4H) scratch: layer-0 gate pre-acts

        # Layer-0 input projection folded into the kernel: one lane-dense
        # matmul for ALL timesteps, off the recurrent critical path.
        xp0_sc[...] = (
            jnp.dot(x_ref[...], wih0_ref[...], preferred_element_type=jnp.float32)
            + b0_ref[...]
        )

        # Load weights once; they stay resident across the whole recurrence.
        whh = [whh0_ref[...]]
        wih = [None]
        bias = [None]
        for l in range(1, num_layers):
            wih_ref, whh_ref, b_ref = extra[3 * (l - 1):3 * (l - 1) + 3]
            wih.append(wih_ref[...])
            whh.append(whh_ref[...])
            bias.append(b_ref[...])

        def cell(xg, h_prev, c_prev, whh_l):
            gates = xg + jnp.dot(h_prev, whh_l, preferred_element_type=jnp.float32)
            if G <= 128:
                # 4H fits one vreg of lanes: one sigmoid pass + one tanh pass
                # over the full (Bp, 4H) tile, then slice — 3 EUP ops per step
                # (incl. tanh(c_new)) instead of ~6 masked sliced passes.
                sig = jax.nn.sigmoid(gates)
                th = jnp.tanh(gates)
                i = sig[:, 0 * H:1 * H]
                f = sig[:, 1 * H:2 * H]
                g = th[:, 2 * H:3 * H]
                o = sig[:, 3 * H:4 * H]
            else:
                i = jax.nn.sigmoid(gates[:, 0 * H:1 * H])
                f = jax.nn.sigmoid(gates[:, 1 * H:2 * H])
                g = jnp.tanh(gates[:, 2 * H:3 * H])
                o = jax.nn.sigmoid(gates[:, 3 * H:4 * H])
            c_new = f * c_prev + i * g
            h_new = o * jnp.tanh(c_new)
            return h_new, c_new

        zeros = jnp.zeros((Bp, H), jnp.float32)
        h = [zeros] * num_layers
        c = [zeros] * num_layers

        # Wavefront over layers: at serial step s, layer l processes t = s - l.
        # Layer l at time t only needs layer l-1 at time t (computed at step
        # s-1, read from the h_old snapshot) and layer l at time t-1, so the
        # serial chain is T + L - 1 steps instead of L * T.
        # Static Python loop = full unroll; fine at 9 steps.  If T or L scale,
        # switch to lax.fori_loop with a capped unroll to bound live ranges.
        for s in range(T + num_layers - 1):
            h_old = list(h)
            c_old = list(c)
            for l in range(num_layers):
                t = s - l
                if 0 <= t < T:
                    if l == 0:
                        # Bp == 8 -> aligned, unmasked full-sublane-tile slice.
                        xg = xp0_sc[pl.ds(t * Bp, Bp), :]
                    else:
                        # Per-step input projection; depends only on the
                        # previous step's layer-(l-1) state, so it overlaps
                        # with this layer's own recurrence math.
                        xg = (jnp.dot(h_old[l - 1], wih[l],
                                      preferred_element_type=jnp.float32)
                              + bias[l])
                    h[l], c[l] = cell(xg, h_old[l], c_old[l], whh[l])

        # MLP head on lstm_out[:, -1, :].  Dropout(0.2) is identity in eval mode.
        h_last = h[num_layers - 1]
        z = jnp.dot(h_last, wf1_ref[...], preferred_element_type=jnp.float32) + bf1_ref[...]
        z = jnp.maximum(z, 0.0)  # ReLU
        out_ref[...] = (
            jnp.dot(z, wf2_ref[...], preferred_element_type=jnp.float32) + bf2_ref[...]
        )

    return kernel


# ------------------------------- Full forward ---------------------------------

@jax.jit
def lstm_model_forward(x, lstm_params, head_params):
    """x: (B, T, input_size) batch_first, matching the PyTorch module."""
    B, T, D = x.shape
    wih0, whh0, b0 = lstm_params[0]
    H = whh0.shape[0]
    num_layers = len(lstm_params)
    w1_t, b1, w2_t, b2 = head_params
    O = w2_t.shape[1]

    # Pad the batch to one full sublane tile (8) so every per-timestep slice of
    # the time-major VMEM buffer is aligned/unmasked; layout-only op, no matmul
    # in the wrapper (the projection itself happens inside the kernel).
    Bp = ((B + 7) // 8) * 8
    x_tm = jnp.transpose(x, (1, 0, 2))                    # (T, B, D) time-major
    x_tm = jnp.pad(x_tm, ((0, 0), (0, Bp - B), (0, 0)))   # (T, Bp, D)
    x_tm = x_tm.reshape(T * Bp, D)

    inputs = [x_tm, wih0, b0, whh0]
    for (wih, whh, b) in lstm_params[1:]:
        inputs += [wih, whh, b]
    inputs += [w1_t, b1, w2_t, b2]

    kernel = _make_fused_kernel(num_layers, T, Bp, H)
    vmem_spec = pl.BlockSpec(memory_space=pltpu.MemorySpace.VMEM)
    out = pl.pallas_call(
        kernel,
        out_shape=jax.ShapeDtypeStruct((Bp, O), jnp.float32),
        in_specs=[vmem_spec] * len(inputs),
        out_specs=vmem_spec,
        scratch_shapes=[
            pltpu.VMEM((T * Bp, 4 * H), jnp.float32),   # layer-0 gate pre-activations
        ],
        compiler_params=pltpu.CompilerParams(vmem_limit_bytes=32 * 1024 * 1024),
    )(*inputs)
    return out[:B]


# ------------------------------ Pure-JAX reference ----------------------------

def lstm_model_ref(x, lstm_params, head_params):
    B = x.shape[0]
    layer_in = x
    for (wih_t, whh_t, b) in lstm_params:
        H = whh_t.shape[0]

        def step(carry, x_t):
            h, c = carry
            g = x_t @ wih_t + h @ whh_t + b
            i = jax.nn.sigmoid(g[:, :H])
            f = jax.nn.sigmoid(g[:, H:2 * H])
            gg = jnp.tanh(g[:, 2 * H:3 * H])
            o = jax.nn.sigmoid(g[:, 3 * H:])
            c = f * c + i * gg
            h = o * jnp.tanh(c)
            return (h, c), h

        xs = jnp.transpose(layer_in, (1, 0, 2))
        init = (jnp.zeros((B, H), jnp.float32), jnp.zeros((B, H), jnp.float32))
        _, hs = jax.lax.scan(step, init, xs)
        layer_in = jnp.transpose(hs, (1, 0, 2))

    last = layer_in[:, -1, :]
    w1_t, b1, w2_t, b2 = head_params
    z = jnp.maximum(last @ w1_t + b1, 0.0)
    return z @ w2_t + b2


# ---------------------------------- Params ------------------------------------

def make_params(key, input_size, hidden_size, num_layers, output_size):
    """Deterministic PyTorch-style uniform init. Weights stored pre-transposed."""
    lstm_params = []
    k_lstm = 1.0 / jnp.sqrt(hidden_size)
    for layer in range(num_layers):
        d_in = input_size if layer == 0 else hidden_size
        key, k1, k2, k3, k4 = jax.random.split(key, 5)
        wih_t = jax.random.uniform(k1, (d_in, 4 * hidden_size), jnp.float32,
                                   -k_lstm, k_lstm)
        whh_t = jax.random.uniform(k2, (hidden_size, 4 * hidden_size), jnp.float32,
                                   -k_lstm, k_lstm)
        b_ih = jax.random.uniform(k3, (4 * hidden_size,), jnp.float32, -k_lstm, k_lstm)
        b_hh = jax.random.uniform(k4, (4 * hidden_size,), jnp.float32, -k_lstm, k_lstm)
        lstm_params.append((wih_t, whh_t, (b_ih + b_hh).reshape(1, -1)))

    key, k1, k2, k3, k4 = jax.random.split(key, 5)
    k_fc = 1.0 / jnp.sqrt(hidden_size)
    w1_t = jax.random.uniform(k1, (hidden_size, 128), jnp.float32, -k_fc, k_fc)
    b1 = jax.random.uniform(k2, (1, 128), jnp.float32, -k_fc, k_fc)
    k_out = 1.0 / jnp.sqrt(128.0)
    w2_t = jax.random.uniform(k3, (128, output_size), jnp.float32, -k_out, k_out)
    b2 = jax.random.uniform(k4, (1, output_size), jnp.float32, -k_out, k_out)
    head_params = (w1_t, b1, w2_t, b2)
    return lstm_params, head_params


# ----------------------------------- Main --------------------------------------

if __name__ == "__main__":
    INPUT_SIZE = 16
    HIDDEN_SIZE = 32
    NUM_LAYERS = 2
    OUTPUT_SIZE = 8
    BATCH = 2
    SEQ = 8

    root = jax.random.PRNGKey(0)
    k_x, k_p = jax.random.split(root)
    x = jax.random.normal(k_x, (BATCH, SEQ, INPUT_SIZE), jnp.float32)

    lstm_params, head_params = make_params(
        k_p, INPUT_SIZE, HIDDEN_SIZE, NUM_LAYERS, OUTPUT_SIZE)

    out = lstm_model_forward(x, lstm_params, head_params)
    out = jax.block_until_ready(out)

    ref = lstm_model_ref(x, lstm_params, head_params)
    assert out.shape == (BATCH, OUTPUT_SIZE), out.shape
    assert jnp.allclose(out, ref, rtol=1e-5, atol=1e-5), (
        "mismatch vs. pure-JAX reference")

    print("KERNEL_OK")
</pallas_src>

<mosaic_0001>
module attributes {stable_mosaic.version = 11 : i64} {
  func.func @kernel(%arg0: memref<64x16xf32, #tpu.memory_space<vmem>>, %arg1: memref<16x128xf32, #tpu.memory_space<vmem>>, %arg2: memref<1x128xf32, #tpu.memory_space<vmem>>, %arg3: memref<32x128xf32, #tpu.memory_space<vmem>>, %arg4: memref<32x128xf32, #tpu.memory_space<vmem>>, %arg5: memref<32x128xf32, #tpu.memory_space<vmem>>, %arg6: memref<1x128xf32, #tpu.memory_space<vmem>>, %arg7: memref<32x128xf32, #tpu.memory_space<vmem>>, %arg8: memref<1x128xf32, #tpu.memory_space<vmem>>, %arg9: memref<128x8xf32, #tpu.memory_space<vmem>>, %arg10: memref<1x8xf32, #tpu.memory_space<vmem>>, %arg11: memref<8x8xf32, #tpu.memory_space<vmem>>, %arg12: memref<64x128xf32, #tpu.memory_space<vmem>>) attributes {dimension_semantics = [], scalar_prefetch = 0 : i64, scratch_operands = 1 : i64, tpu.core_type = #tpu.core_type<tc>} {
    %c0 = arith.constant 0 : index
    %c0_0 = arith.constant 0 : index
    %0 = vector.load %arg0[%c0, %c0_0] : memref<64x16xf32, #tpu.memory_space<vmem>>, vector<64x16xf32>
    %c0_1 = arith.constant 0 : index
    %c0_2 = arith.constant 0 : index
    %1 = vector.load %arg1[%c0_1, %c0_2] : memref<16x128xf32, #tpu.memory_space<vmem>>, vector<16x128xf32>
    %cst = arith.constant dense<0.000000e+00> : vector<64x128xf32>
    %2 = tpu.matmul %0, %1, %cst {dimension_numbers = #tpu.dot_dimension_numbers<[1], [0], [0], [1], [0, 0, 1, 1], [], []>} : vector<64x16xf32>, vector<16x128xf32>, vector<64x128xf32> -> vector<64x128xf32>
    %c0_3 = arith.constant 0 : index
    %c0_4 = arith.constant 0 : index
    %3 = vector.load %arg2[%c0_3, %c0_4] : memref<1x128xf32, #tpu.memory_space<vmem>>, vector<1x128xf32>
    %4 = vector.broadcast %3 : vector<1x128xf32> to vector<64x128xf32>
    %5 = arith.addf %2, %4 : vector<64x128xf32>
    %c0_5 = arith.constant 0 : index
    %c0_6 = arith.constant 0 : index
    %6 = vector.load %arg12[%c0_5, %c0_6] : memref<64x128xf32, #tpu.memory_space<vmem>>, vector<64x128xf32>
    tpu.vector_store %arg12[%c0_5, %c0_6], %5 {strides = array<i32>} : memref<64x128xf32, #tpu.memory_space<vmem>>, vector<64x128xf32>,
    %c0_7 = arith.constant 0 : index
    %c0_8 = arith.constant 0 : index
    %7 = vector.load %arg3[%c0_7, %c0_8] : memref<32x128xf32, #tpu.memory_space<vmem>>, vector<32x128xf32>
    %c0_9 = arith.constant 0 : index
    %c0_10 = arith.constant 0 : index
    %8 = vector.load %arg4[%c0_9, %c0_10] : memref<32x128xf32, #tpu.memory_space<vmem>>, vector<32x128xf32>
    %c0_11 = arith.constant 0 : index
    %c0_12 = arith.constant 0 : index
    %9 = vector.load %arg5[%c0_11, %c0_12] : memref<32x128xf32, #tpu.memory_space<vmem>>, vector<32x128xf32>
    %c0_13 = arith.constant 0 : index
    %c0_14 = arith.constant 0 : index
    %10 = vector.load %arg6[%c0_13, %c0_14] : memref<1x128xf32, #tpu.memory_space<vmem>>, vector<1x128xf32>
    %cst_15 = arith.constant 0.000000e+00 : f32
    %11 = vector.broadcast %cst_15 : f32 to vector<8x32xf32>
    %c0_16 = arith.constant 0 : index
    %c0_17 = arith.constant 0 : index
    %12 = vector.load %arg12[%c0_16, %c0_17] : memref<64x128xf32, #tpu.memory_space<vmem>>, vector<8x128xf32>
    %cst_18 = arith.constant dense<0.000000e+00> : vector<8x128xf32>
    %13 = tpu.matmul %11, %7, %cst_18 {dimension_numbers = #tpu.dot_dimension_numbers<[1], [0], [0], [1], [0, 0, 1, 1], [], []>} : vector<8x32xf32>, vector<32x128xf32>, vector<8x128xf32> -> vector<8x128xf32>
    %14 = arith.addf %12, %13 : vector<8x128xf32>
    %15 = arith.negf %14 : vector<8x128xf32>
    %16 = math.exp %15 : vector<8x128xf32>
    %cst_19 = arith.constant 1.000000e+00 : f32
    %17 = vector.broadcast %cst_19 : f32 to vector<8x128xf32>
    %18 = arith.addf %17, %16 : vector<8x128xf32>
    %19 = arith.divf %17, %18 : vector<8x128xf32>
    %20 = math.tanh %14 : vector<8x128xf32>
    %21 = vector.extract_strided_slice %19 {offsets = [0, 0], sizes = [8, 32], strides = [1, 1]} : vector<8x128xf32> to vector<8x32xf32>
    %22 = vector.extract_strided_slice %19 {offsets = [0, 32], sizes = [8, 32], strides = [1, 1]} : vector<8x128xf32> to vector<8x32xf32>
    %23 = vector.extract_strided_slice %20 {offsets = [0, 64], sizes = [8, 32], strides = [1, 1]} : vector<8x128xf32> to vector<8x32xf32>
    %24 = vector.extract_strided_slice %19 {offsets = [0, 96], sizes = [8, 32], strides = [1, 1]} : vector<8x128xf32> to vector<8x32xf32>
    %25 = arith.mulf %22, %11 : vector<8x32xf32>
    %26 = arith.mulf %21, %23 : vector<8x32xf32>
    %27 = arith.addf %25, %26 : vector<8x32xf32>
    %28 = math.tanh %27 : vector<8x32xf32>
    %29 = arith.mulf %24, %28 : vector<8x32xf32>
    %c8 = arith.constant 8 : index
    %c0_20 = arith.constant 0 : index
    %30 = vector.load %arg12[%c8, %c0_20] : memref<64x128xf32, #tpu.memory_space<vmem>>, vector<8x128xf32>
    %cst_21 = arith.constant dense<0.000000e+00> : vector<8x128xf32>
    %31 = tpu.matmul %29, %7, %cst_21 {dimension_numbers = #tpu.dot_dimension_numbers<[1], [0], [0], [1], [0, 0, 1, 1], [], []>} : vector<8x32xf32>, vector<32x128xf32>, vector<8x128xf32> -> vector<8x128xf32>
    %32 = arith.addf %30, %31 : vector<8x128xf32>
    %33 = arith.negf %32 : vector<8x128xf32>
    %34 = math.exp %33 : vector<8x128xf32>
    %cst_22 = arith.constant 1.000000e+00 : f32
    %35 = vector.broadcast %cst_22 : f32 to vector<8x128xf32>
    %36 = arith.addf %35, %34 : vector<8x128xf32>
    %37 = arith.divf %35, %36 : vector<8x128xf32>
    %38 = math.tanh %32 : vector<8x128xf32>
    %39 = vector.extract_strided_slice %37 {offsets = [0, 0], sizes = [8, 32], strides = [1, 1]} : vector<8x128xf32> to vector<8x32xf32>
    %40 = vector.extract_strided_slice %37 {offsets = [0, 32], sizes = [8, 32], strides = [1, 1]} : vector<8x128xf32> to vector<8x32xf32>
    %41 = vector.extract_strided_slice %38 {offsets = [0, 64], sizes = [8, 32], strides = [1, 1]} : vector<8x128xf32> to vector<8x32xf32>
    %42 = vector.extract_strided_slice %37 {offsets = [0, 96], sizes = [8, 32], strides = [1, 1]} : vector<8x128xf32> to vector<8x32xf32>
    %43 = arith.mulf %40, %27 : vector<8x32xf32>
    %44 = arith.mulf %39, %41 : vector<8x32xf32>
    %45 = arith.addf %43, %44 : vector<8x32xf32>
    %46 = math.tanh %45 : vector<8x32xf32>
    %47 = arith.mulf %42, %46 : vector<8x32xf32>
    %cst_23 = arith.constant dense<0.000000e+00> : vector<8x128xf32>
    %48 = tpu.matmul %29, %8, %cst_23 {dimension_numbers = #tpu.dot_dimension_numbers<[1], [0], [0], [1], [0, 0, 1, 1], [], []>} : vector<8x32xf32>, vector<32x128xf32>, vector<8x128xf32> -> vector<8x128xf32>
    %49 = vector.broadcast %10 : vector<1x128xf32> to vector<8x128xf32>
    %50 = arith.addf %48, %49 : vector<8x128xf32>
    %cst_24 = arith.constant dense<0.000000e+00> : vector<8x128xf32>
    %51 = tpu.matmul %11, %9, %cst_24 {dimension_numbers = #tpu.dot_dimension_numbers<[1], [0], [0], [1], [0, 0, 1, 1], [], []>} : vector<8x32xf32>, vector<32x128xf32>, vector<8x128xf32> -> vector<8x128xf32>
    %52 = arith.addf %50, %51 : vector<8x128xf32>
    %53 = arith.negf %52 : vector<8x128xf32>
    %54 = math.exp %53 : vector<8x128xf32>
    %cst_25 = arith.constant 1.000000e+00 : f32
    %55 = vector.broadcast %cst_25 : f32 to vector<8x128xf32>
    %56 = arith.addf %55, %54 : vector<8x128xf32>
    %57 = arith.divf %55, %56 : vector<8x128xf32>
    %58 = math.tanh %52 : vector<8x128xf32>
    %59 = vector.extract_strided_slice %57 {offsets = [0, 0], sizes = [8, 32], strides = [1, 1]} : vector<8x128xf32> to vector<8x32xf32>
    %60 = vector.extract_strided_slice %57 {offsets = [0, 32], sizes = [8, 32], strides = [1, 1]} : vector<8x128xf32> to vector<8x32xf32>
    %61 = vector.extract_strided_slice %58 {offsets = [0, 64], sizes = [8, 32], strides = [1, 1]} : vector<8x128xf32> to vector<8x32xf32>
    %62 = vector.extract_strided_slice %57 {offsets = [0, 96], sizes = [8, 32], strides = [1, 1]} : vector<8x128xf32> to vector<8x32xf32>
    %63 = arith.mulf %60, %11 : vector<8x32xf32>
    %64 = arith.mulf %59, %61 : vector<8x32xf32>
    %65 = arith.addf %63, %64 : vector<8x32xf32>
    %66 = math.tanh %65 : vector<8x32xf32>
    %67 = arith.mulf %62, %66 : vector<8x32xf32>
    %c16 = arith.constant 16 : index
    %c0_26 = arith.constant 0 : index
    %68 = vector.load %arg12[%c16, %c0_26] : memref<64x128xf32, #tpu.memory_space<vmem>>, vector<8x128xf32>
    %cst_27 = arith.constant dense<0.000000e+00> : vector<8x128xf32>
    %69 = tpu.matmul %47, %7, %cst_27 {dimension_numbers = #tpu.dot_dimension_numbers<[1], [0], [0], [1], [0, 0, 1, 1], [], []>} : vector<8x32xf32>, vector<32x128xf32>, vector<8x128xf32> -> vector<8x128xf32>
    %70 = arith.addf %68, %69 : vector<8x128xf32>
    %71 = arith.negf %70 : vector<8x128xf32>
    %72 = math.exp %71 : vector<8x128xf32>
    %cst_28 = arith.constant 1.000000e+00 : f32
    %73 = vector.broadcast %cst_28 : f32 to vector<8x128xf32>
    %74 = arith.addf %73, %72 : vector<8x128xf32>
    %75 = arith.divf %73, %74 : vector<8x128xf32>
    %76 = math.tanh %70 : vector<8x128xf32>
    %77 = vector.extract_strided_slice %75 {offsets = [0, 0], sizes = [8, 32], strides = [1, 1]} : vector<8x128xf32> to vector<8x32xf32>
    %78 = vector.extract_strided_slice %75 {offsets = [0, 32], sizes = [8, 32], strides = [1, 1]} : vector<8x128xf32> to vector<8x32xf32>
    %79 = vector.extract_strided_slice %76 {offsets = [0, 64], sizes = [8, 32], strides = [1, 1]} : vector<8x128xf32> to vector<8x32xf32>
    %80 = vector.extract_strided_slice %75 {offsets = [0, 96], sizes = [8, 32], strides = [1, 1]} : vector<8x128xf32> to vector<8x32xf32>
    %81 = arith.mulf %78, %45 : vector<8x32xf32>
    %82 = arith.mulf %77, %79 : vector<8x32xf32>
    %83 = arith.addf %81, %82 : vector<8x32xf32>
    %84 = math.tanh %83 : vector<8x32xf32>
    %85 = arith.mulf %80, %84 : vector<8x32xf32>
    %cst_29 = arith.constant dense<0.000000e+00> : vector<8x128xf32>
    %86 = tpu.matmul %47, %8, %cst_29 {dimension_numbers = #tpu.dot_dimension_numbers<[1], [0], [0], [1], [0, 0, 1, 1], [], []>} : vector<8x32xf32>, vector<32x128xf32>, vector<8x128xf32> -> vector<8x128xf32>
    %87 = vector.broadcast %10 : vector<1x128xf32> to vector<8x128xf32>
    %88 = arith.addf %86, %87 : vector<8x128xf32>
    %cst_30 = arith.constant dense<0.000000e+00> : vector<8x128xf32>
    %89 = tpu.matmul %67, %9, %cst_30 {dimension_numbers = #tpu.dot_dimension_numbers<[1], [0], [0], [1], [0, 0, 1, 1], [], []>} : vector<8x32xf32>, vector<32x128xf32>, vector<8x128xf32> -> vector<8x128xf32>
    %90 = arith.addf %88, %89 : vector<8x128xf32>
    %91 = arith.negf %90 : vector<8x128xf32>
    %92 = math.exp %91 : vector<8x128xf32>
    %cst_31 = arith.constant 1.000000e+00 : f32
    %93 = vector.broadcast %cst_31 : f32 to vector<8x128xf32>
    %94 = arith.addf %93, %92 : vector<8x128xf32>
    %95 = arith.divf %93, %94 : vector<8x128xf32>
    %96 = math.tanh %90 : vector<8x128xf32>
    %97 = vector.extract_strided_slice %95 {offsets = [0, 0], sizes = [8, 32], strides = [1, 1]} : vector<8x128xf32> to vector<8x32xf32>
    %98 = vector.extract_strided_slice %95 {offsets = [0, 32], sizes = [8, 32], strides = [1, 1]} : vector<8x128xf32> to vector<8x32xf32>
    %99 = vector.extract_strided_slice %96 {offsets = [0, 64], sizes = [8, 32], strides = [1, 1]} : vector<8x128xf32> to vector<8x32xf32>
    %100 = vector.extract_strided_slice %95 {offsets = [0, 96], sizes = [8, 32], strides = [1, 1]} : vector<8x128xf32> to vector<8x32xf32>
    %101 = arith.mulf %98, %65 : vector<8x32xf32>
    %102 = arith.mulf %97, %99 : vector<8x32xf32>
    %103 = arith.addf %101, %102 : vector<8x32xf32>
    %104 = math.tanh %103 : vector<8x32xf32>
    %105 = arith.mulf %100, %104 : vector<8x32xf32>
    %c24 = arith.constant 24 : index
    %c0_32 = arith.constant 0 : index
    %106 = vector.load %arg12[%c24, %c0_32] : memref<64x128xf32, #tpu.memory_space<vmem>>, vector<8x128xf32>
    %cst_33 = arith.constant dense<0.000000e+00> : vector<8x128xf32>
    %107 = tpu.matmul %85, %7, %cst_33 {dimension_numbers = #tpu.dot_dimension_numbers<[1], [0], [0], [1], [0, 0, 1, 1], [], []>} : vector<8x32xf32>, vector<32x128xf32>, vector<8x128xf32> -> vector<8x128xf32>
    %108 = arith.addf %106, %107 : vector<8x128xf32>
    %109 = arith.negf %108 : vector<8x128xf32>
    %110 = math.exp %109 : vector<8x128xf32>
    %cst_34 = arith.constant 1.000000e+00 : f32
    %111 = vector.broadcast %cst_34 : f32 to vector<8x128xf32>
    %112 = arith.addf %111, %110 : vector<8x128xf32>
    %113 = arith.divf %111, %112 : vector<8x128xf32>
    %114 = math.tanh %108 : vector<8x128xf32>
    %115 = vector.extract_strided_slice %113 {offsets = [0, 0], sizes = [8, 32], strides = [1, 1]} : vector<8x128xf32> to vector<8x32xf32>
    %116 = vector.extract_strided_slice %113 {offsets = [0, 32], sizes = [8, 32], strides = [1, 1]} : vector<8x128xf32> to vector<8x32xf32>
    %117 = vector.extract_strided_slice %114 {offsets = [0, 64], sizes = [8, 32], strides = [1, 1]} : vector<8x128xf32> to vector<8x32xf32>
    %118 = vector.extract_strided_slice %113 {offsets = [0, 96], sizes = [8, 32], strides = [1, 1]} : vector<8x128xf32> to vector<8x32xf32>
    %119 = arith.mulf %116, %83 : vector<8x32xf32>
    %120 = arith.mulf %115, %117 : vector<8x32xf32>
    %121 = arith.addf %119, %120 : vector<8x32xf32>
    %122 = math.tanh %121 : vector<8x32xf32>
    %123 = arith.mulf %118, %122 : vector<8x32xf32>
    %cst_35 = arith.constant dense<0.000000e+00> : vector<8x128xf32>
    %124 = tpu.matmul %85, %8, %cst_35 {dimension_numbers = #tpu.dot_dimension_numbers<[1], [0], [0], [1], [0, 0, 1, 1], [], []>} : vector<8x32xf32>, vector<32x128xf32>, vector<8x128xf32> -> vector<8x128xf32>
    %125 = vector.broadcast %10 : vector<1x128xf32> to vector<8x128xf32>
    %126 = arith.addf %124, %125 : vector<8x128xf32>
    %cst_36 = arith.constant dense<0.000000e+00> : vector<8x128xf32>
    %127 = tpu.matmul %105, %9, %cst_36 {dimension_numbers = #tpu.dot_dimension_numbers<[1], [0], [0], [1], [0, 0, 1, 1], [], []>} : vector<8x32xf32>, vector<32x128xf32>, vector<8x128xf32> -> vector<8x128xf32>
    %128 = arith.addf %126, %127 : vector<8x128xf32>
    %129 = arith.negf %128 : vector<8x128xf32>
    %130 = math.exp %129 : vector<8x128xf32>
    %cst_37 = arith.constant 1.000000e+00 : f32
    %131 = vector.broadcast %cst_37 : f32 to vector<8x128xf32>
    %132 = arith.addf %131, %130 : vector<8x128xf32>
    %133 = arith.divf %131, %132 : vector<8x128xf32>
    %134 = math.tanh %128 : vector<8x128xf32>
    %135 = vector.extract_strided_slice %133 {offsets = [0, 0], sizes = [8, 32], strides = [1, 1]} : vector<8x128xf32> to vector<8x32xf32>
    %136 = vector.extract_strided_slice %133 {offsets = [0, 32], sizes = [8, 32], strides = [1, 1]} : vector<8x128xf32> to vector<8x32xf32>
    %137 = vector.extract_strided_slice %134 {offsets = [0, 64], sizes = [8, 32], strides = [1, 1]} : vector<8x128xf32> to vector<8x32xf32>
    %138 = vector.extract_strided_slice %133 {offsets = [0, 96], sizes = [8, 32], strides = [1, 1]} : vector<8x128xf32> to vector<8x32xf32>
    %139 = arith.mulf %136, %103 : vector<8x32xf32>
    %140 = arith.mulf %135, %137 : vector<8x32xf32>
    %141 = arith.addf %139, %140 : vector<8x32xf32>
    %142 = math.tanh %141 : vector<8x32xf32>
    %143 = arith.mulf %138, %142 : vector<8x32xf32>
    %c32 = arith.constant 32 : index
    %c0_38 = arith.constant 0 : index
    %144 = vector.load %arg12[%c32, %c0_38] : memref<64x128xf32, #tpu.memory_space<vmem>>, vector<8x128xf32>
    %cst_39 = arith.constant dense<0.000000e+00> : vector<8x128xf32>
    %145 = tpu.matmul %123, %7, %cst_39 {dimension_numbers = #tpu.dot_dimension_numbers<[1], [0], [0], [1], [0, 0, 1, 1], [], []>} : vector<8x32xf32>, vector<32x128xf32>, vector<8x128xf32> -> vector<8x128xf32>
    %146 = arith.addf %144, %145 : vector<8x128xf32>
    %147 = arith.negf %146 : vector<8x128xf32>
    %148 = math.exp %147 : vector<8x128xf32>
    %cst_40 = arith.constant 1.000000e+00 : f32
    %149 = vector.broadcast %cst_40 : f32 to vector<8x128xf32>
    %150 = arith.addf %149, %148 : vector<8x128xf32>
    %151 = arith.divf %149, %150 : vector<8x128xf32>
    %152 = math.tanh %146 : vector<8x128xf32>
    %153 = vector.extract_strided_slice %151 {offsets = [0, 0], sizes = [8, 32], strides = [1, 1]} : vector<8x128xf32> to vector<8x32xf32>
    %154 = vector.extract_strided_slice %151 {offsets = [0, 32], sizes = [8, 32], strides = [1, 1]} : vector<8x128xf32> to vector<8x32xf32>
    %155 = vector.extract_strided_slice %152 {offsets = [0, 64], sizes = [8, 32], strides = [1, 1]} : vector<8x128xf32> to vector<8x32xf32>
    %156 = vector.extract_strided_slice %151 {offsets = [0, 96], sizes = [8, 32], strides = [1, 1]} : vector<8x128xf32> to vector<8x32xf32>
    %157 = arith.mulf %154, %121 : vector<8x32xf32>
    %158 = arith.mulf %153, %155 : vector<8x32xf32>
    %159 = arith.addf %157, %158 : vector<8x32xf32>
    %160 = math.tanh %159 : vector<8x32xf32>
    %161 = arith.mulf %156, %160 : vector<8x32xf32>
    %cst_41 = arith.constant dense<0.000000e+00> : vector<8x128xf32>
    %162 = tpu.matmul %123, %8, %cst_41 {dimension_numbers = #tpu.dot_dimension_numbers<[1], [0], [0], [1], [0, 0, 1, 1], [], []>} : vector<8x32xf32>, vector<32x128xf32>, vector<8x128xf32> -> vector<8x128xf32>
    %163 = vector.broadcast %10 : vector<1x128xf32> to vector<8x128xf32>
    %164 = arith.addf %162, %163 : vector<8x128xf32>
    %cst_42 = arith.constant dense<0.000000e+00> : vector<8x128xf32>
    %165 = tpu.matmul %143, %9, %cst_42 {dimension_numbers = #tpu.dot_dimension_numbers<[1], [0], [0], [1], [0, 0, 1, 1], [], []>} : vector<8x32xf32>, vector<32x128xf32>, vector<8x128xf32> -> vector<8x128xf32>
    %166 = arith.addf %164, %165 : vector<8x128xf32>
    %167 = arith.negf %166 : vector<8x128xf32>
    %168 = math.exp %167 : vector<8x128xf32>
    %cst_43 = arith.constant 1.000000e+00 : f32
    %169 = vector.broadcast %cst_43 : f32 to vector<8x128xf32>
    %170 = arith.addf %169, %168 : vector<8x128xf32>
    %171 = arith.divf %169, %170 : vector<8x128xf32>
    %172 = math.tanh %166 : vector<8x128xf32>
    %173 = vector.extract_strided_slice %171 {offsets = [0, 0], sizes = [8, 32], strides = [1, 1]} : vector<8x128xf32> to vector<8x32xf32>
    %174 = vector.extract_strided_slice %171 {offsets = [0, 32], sizes = [8, 32], strides = [1, 1]} : vector<8x128xf32> to vector<8x32xf32>
    %175 = vector.extract_strided_slice %172 {offsets = [0, 64], sizes = [8, 32], strides = [1, 1]} : vector<8x128xf32> to vector<8x32xf32>
    %176 = vector.extract_strided_slice %171 {offsets = [0, 96], sizes = [8, 32], strides = [1, 1]} : vector<8x128xf32> to vector<8x32xf32>
    %177 = arith.mulf %174, %141 : vector<8x32xf32>
    %178 = arith.mulf %173, %175 : vector<8x32xf32>
    %179 = arith.addf %177, %178 : vector<8x32xf32>
    %180 = math.tanh %179 : vector<8x32xf32>
    %181 = arith.mulf %176, %180 : vector<8x32xf32>
    %c40 = arith.constant 40 : index
    %c0_44 = arith.constant 0 : index
    %182 = vector.load %arg12[%c40, %c0_44] : memref<64x128xf32, #tpu.memory_space<vmem>>, vector<8x128xf32>
    %cst_45 = arith.constant dense<0.000000e+00> : vector<8x128xf32>
    %183 = tpu.matmul %161, %7, %cst_45 {dimension_numbers = #tpu.dot_dimension_numbers<[1], [0], [0], [1], [0, 0, 1, 1], [], []>} : vector<8x32xf32>, vector<32x128xf32>, vector<8x128xf32> -> vector<8x128xf32>
    %184 = arith.addf %182, %183 : vector<8x128xf32>
    %185 = arith.negf %184 : vector<8x128xf32>
    %186 = math.exp %185 : vector<8x128xf32>
    %cst_46 = arith.constant 1.000000e+00 : f32
    %187 = vector.broadcast %cst_46 : f32 to vector<8x128xf32>
    %188 = arith.addf %187, %186 : vector<8x128xf32>
    %189 = arith.divf %187, %188 : vector<8x128xf32>
    %190 = math.tanh %184 : vector<8x128xf32>
    %191 = vector.extract_strided_slice %189 {offsets = [0, 0], sizes = [8, 32], strides = [1, 1]} : vector<8x128xf32> to vector<8x32xf32>
    %192 = vector.extract_strided_slice %189 {offsets = [0, 32], sizes = [8, 32], strides = [1, 1]} : vector<8x128xf32> to vector<8x32xf32>
    %193 = vector.extract_strided_slice %190 {offsets = [0, 64], sizes = [8, 32], strides = [1, 1]} : vector<8x128xf32> to vector<8x32xf32>
    %194 = vector.extract_strided_slice %189 {offsets = [0, 96], sizes = [8, 32], strides = [1, 1]} : vector<8x128xf32> to vector<8x32xf32>
    %195 = arith.mulf %192, %159 : vector<8x32xf32>
    %196 = arith.mulf %191, %193 : vector<8x32xf32>
    %197 = arith.addf %195, %196 : vector<8x32xf32>
    %198 = math.tanh %197 : vector<8x32xf32>
    %199 = arith.mulf %194, %198 : vector<8x32xf32>
    %cst_47 = arith.constant dense<0.000000e+00> : vector<8x128xf32>
    %200 = tpu.matmul %161, %8, %cst_47 {dimension_numbers = #tpu.dot_dimension_numbers<[1], [0], [0], [1], [0, 0, 1, 1], [], []>} : vector<8x32xf32>, vector<32x128xf32>, vector<8x128xf32> -> vector<8x128xf32>
    %201 = vector.broadcast %10 : vector<1x128xf32> to vector<8x128xf32>
    %202 = arith.addf %200, %201 : vector<8x128xf32>
    %cst_48 = arith.constant dense<0.000000e+00> : vector<8x128xf32>
    %203 = tpu.matmul %181, %9, %cst_48 {dimension_numbers = #tpu.dot_dimension_numbers<[1], [0], [0], [1], [0, 0, 1, 1], [], []>} : vector<8x32xf32>, vector<32x128xf32>, vector<8x128xf32> -> vector<8x128xf32>
    %204 = arith.addf %202, %203 : vector<8x128xf32>
    %205 = arith.negf %204 : vector<8x128xf32>
    %206 = math.exp %205 : vector<8x128xf32>
    %cst_49 = arith.constant 1.000000e+00 : f32
    %207 = vector.broadcast %cst_49 : f32 to vector<8x128xf32>
    %208 = arith.addf %207, %206 : vector<8x128xf32>
    %209 = arith.divf %207, %208 : vector<8x128xf32>
    %210 = math.tanh %204 : vector<8x128xf32>
    %211 = vector.extract_strided_slice %209 {offsets = [0, 0], sizes = [8, 32], strides = [1, 1]} : vector<8x128xf32> to vector<8x32xf32>
    %212 = vector.extract_strided_slice %209 {offsets = [0, 32], sizes = [8, 32], strides = [1, 1]} : vector<8x128xf32> to vector<8x32xf32>
    %213 = vector.extract_strided_slice %210 {offsets = [0, 64], sizes = [8, 32], strides = [1, 1]} : vector<8x128xf32> to vector<8x32xf32>
    %214 = vector.extract_strided_slice %209 {offsets = [0, 96], sizes = [8, 32], strides = [1, 1]} : vector<8x128xf32> to vector<8x32xf32>
    %215 = arith.mulf %212, %179 : vector<8x32xf32>
    %216 = arith.mulf %211, %213 : vector<8x32xf32>
    %217 = arith.addf %215, %216 : vector<8x32xf32>
    %218 = math.tanh %217 : vector<8x32xf32>
    %219 = arith.mulf %214, %218 : vector<8x32xf32>
    %c48 = arith.constant 48 : index
    %c0_50 = arith.constant 0 : index
    %220 = vector.load %arg12[%c48, %c0_50] : memref<64x128xf32, #tpu.memory_space<vmem>>, vector<8x128xf32>
    %cst_51 = arith.constant dense<0.000000e+00> : vector<8x128xf32>
    %221 = tpu.matmul %199, %7, %cst_51 {dimension_numbers = #tpu.dot_dimension_numbers<[1], [0], [0], [1], [0, 0, 1, 1], [], []>} : vector<8x32xf32>, vector<32x128xf32>, vector<8x128xf32> -> vector<8x128xf32>
    %222 = arith.addf %220, %221 : vector<8x128xf32>
    %223 = arith.negf %222 : vector<8x128xf32>
    %224 = math.exp %223 : vector<8x128xf32>
    %cst_52 = arith.constant 1.000000e+00 : f32
    %225 = vector.broadcast %cst_52 : f32 to vector<8x128xf32>
    %226 = arith.addf %225, %224 : vector<8x128xf32>
    %227 = arith.divf %225, %226 : vector<8x128xf32>
    %228 = math.tanh %222 : vector<8x128xf32>
    %229 = vector.extract_strided_slice %227 {offsets = [0, 0], sizes = [8, 32], strides = [1, 1]} : vector<8x128xf32> to vector<8x32xf32>
    %230 = vector.extract_strided_slice %227 {offsets = [0, 32], sizes = [8, 32], strides = [1, 1]} : vector<8x128xf32> to vector<8x32xf32>
    %231 = vector.extract_strided_slice %228 {offsets = [0, 64], sizes = [8, 32], strides = [1, 1]} : vector<8x128xf32> to vector<8x32xf32>
    %232 = vector.extract_strided_slice %227 {offsets = [0, 96], sizes = [8, 32], strides = [1, 1]} : vector<8x128xf32> to vector<8x32xf32>
    %233 = arith.mulf %230, %197 : vector<8x32xf32>
    %234 = arith.mulf %229, %231 : vector<8x32xf32>
    %235 = arith.addf %233, %234 : vector<8x32xf32>
    %236 = math.tanh %235 : vector<8x32xf32>
    %237 = arith.mulf %232, %236 : vector<8x32xf32>
    %cst_53 = arith.constant dense<0.000000e+00> : vector<8x128xf32>
    %238 = tpu.matmul %199, %8, %cst_53 {dimension_numbers = #tpu.dot_dimension_numbers<[1], [0], [0], [1], [0, 0, 1, 1], [], []>} : vector<8x32xf32>, vector<32x128xf32>, vector<8x128xf32> -> vector<8x128xf32>
    %239 = vector.broadcast %10 : vector<1x128xf32> to vector<8x128xf32>
    %240 = arith.addf %238, %239 : vector<8x128xf32>
    %cst_54 = arith.constant dense<0.000000e+00> : vector<8x128xf32>
    %241 = tpu.matmul %219, %9, %cst_54 {dimension_numbers = #tpu.dot_dimension_numbers<[1], [0], [0], [1], [0, 0, 1, 1], [], []>} : vector<8x32xf32>, vector<32x128xf32>, vector<8x128xf32> -> vector<8x128xf32>
    %242 = arith.addf %240, %241 : vector<8x128xf32>
    %243 = arith.negf %242 : vector<8x128xf32>
    %244 = math.exp %243 : vector<8x128xf32>
    %cst_55 = arith.constant 1.000000e+00 : f32
    %245 = vector.broadcast %cst_55 : f32 to vector<8x128xf32>
    %246 = arith.addf %245, %244 : vector<8x128xf32>
    %247 = arith.divf %245, %246 : vector<8x128xf32>
    %248 = math.tanh %242 : vector<8x128xf32>
    %249 = vector.extract_strided_slice %247 {offsets = [0, 0], sizes = [8, 32], strides = [1, 1]} : vector<8x128xf32> to vector<8x32xf32>
    %250 = vector.extract_strided_slice %247 {offsets = [0, 32], sizes = [8, 32], strides = [1, 1]} : vector<8x128xf32> to vector<8x32xf32>
    %251 = vector.extract_strided_slice %248 {offsets = [0, 64], sizes = [8, 32], strides = [1, 1]} : vector<8x128xf32> to vector<8x32xf32>
    %252 = vector.extract_strided_slice %247 {offsets = [0, 96], sizes = [8, 32], strides = [1, 1]} : vector<8x128xf32> to vector<8x32xf32>
    %253 = arith.mulf %250, %217 : vector<8x32xf32>
    %254 = arith.mulf %249, %251 : vector<8x32xf32>
    %255 = arith.addf %253, %254 : vector<8x32xf32>
    %256 = math.tanh %255 : vector<8x32xf32>
    %257 = arith.mulf %252, %256 : vector<8x32xf32>
    %c56 = arith.constant 56 : index
    %c0_56 = arith.constant 0 : index
    %258 = vector.load %arg12[%c56, %c0_56] : memref<64x128xf32, #tpu.memory_space<vmem>>, vector<8x128xf32>
    %cst_57 = arith.constant dense<0.000000e+00> : vector<8x128xf32>
    %259 = tpu.matmul %237, %7, %cst_57 {dimension_numbers = #tpu.dot_dimension_numbers<[1], [0], [0], [1], [0, 0, 1, 1], [], []>} : vector<8x32xf32>, vector<32x128xf32>, vector<8x128xf32> -> vector<8x128xf32>
    %260 = arith.addf %258, %259 : vector<8x128xf32>
    %261 = arith.negf %260 : vector<8x128xf32>
    %262 = math.exp %261 : vector<8x128xf32>
    %cst_58 = arith.constant 1.000000e+00 : f32
    %263 = vector.broadcast %cst_58 : f32 to vector<8x128xf32>
    %264 = arith.addf %263, %262 : vector<8x128xf32>
    %265 = arith.divf %263, %264 : vector<8x128xf32>
    %266 = math.tanh %260 : vector<8x128xf32>
    %267 = vector.extract_strided_slice %265 {offsets = [0, 0], sizes = [8, 32], strides = [1, 1]} : vector<8x128xf32> to vector<8x32xf32>
    %268 = vector.extract_strided_slice %265 {offsets = [0, 32], sizes = [8, 32], strides = [1, 1]} : vector<8x128xf32> to vector<8x32xf32>
    %269 = vector.extract_strided_slice %266 {offsets = [0, 64], sizes = [8, 32], strides = [1, 1]} : vector<8x128xf32> to vector<8x32xf32>
    %270 = vector.extract_strided_slice %265 {offsets = [0, 96], sizes = [8, 32], strides = [1, 1]} : vector<8x128xf32> to vector<8x32xf32>
    %271 = arith.mulf %268, %235 : vector<8x32xf32>
    %272 = arith.mulf %267, %269 : vector<8x32xf32>
    %273 = arith.addf %271, %272 : vector<8x32xf32>
    %274 = math.tanh %273 : vector<8x32xf32>
    %275 = arith.mulf %270, %274 : vector<8x32xf32>
    %cst_59 = arith.constant dense<0.000000e+00> : vector<8x128xf32>
    %276 = tpu.matmul %237, %8, %cst_59 {dimension_numbers = #tpu.dot_dimension_numbers<[1], [0], [0], [1], [0, 0, 1, 1], [], []>} : vector<8x32xf32>, vector<32x128xf32>, vector<8x128xf32> -> vector<8x128xf32>
    %277 = vector.broadcast %10 : vector<1x128xf32> to vector<8x128xf32>
    %278 = arith.addf %276, %277 : vector<8x128xf32>
    %cst_60 = arith.constant dense<0.000000e+00> : vector<8x128xf32>
    %279 = tpu.matmul %257, %9, %cst_60 {dimension_numbers = #tpu.dot_dimension_numbers<[1], [0], [0], [1], [0, 0, 1, 1], [], []>} : vector<8x32xf32>, vector<32x128xf32>, vector<8x128xf32> -> vector<8x128xf32>
    %280 = arith.addf %278, %279 : vector<8x128xf32>
    %281 = arith.negf %280 : vector<8x128xf32>
    %282 = math.exp %281 : vector<8x128xf32>
    %cst_61 = arith.constant 1.000000e+00 : f32
    %283 = vector.broadcast %cst_61 : f32 to vector<8x128xf32>
    %284 = arith.addf %283, %282 : vector<8x128xf32>
    %285 = arith.divf %283, %284 : vector<8x128xf32>
    %286 = math.tanh %280 : vector<8x128xf32>
    %287 = vector.extract_strided_slice %285 {offsets = [0, 0], sizes = [8, 32], strides = [1, 1]} : vector<8x128xf32> to vector<8x32xf32>
    %288 = vector.extract_strided_slice %285 {offsets = [0, 32], sizes = [8, 32], strides = [1, 1]} : vector<8x128xf32> to vector<8x32xf32>
    %289 = vector.extract_strided_slice %286 {offsets = [0, 64], sizes = [8, 32], strides = [1, 1]} : vector<8x128xf32> to vector<8x32xf32>
    %290 = vector.extract_strided_slice %285 {offsets = [0, 96], sizes = [8, 32], strides = [1, 1]} : vector<8x128xf32> to vector<8x32xf32>
    %291 = arith.mulf %288, %255 : vector<8x32xf32>
    %292 = arith.mulf %287, %289 : vector<8x32xf32>
    %293 = arith.addf %291, %292 : vector<8x32xf32>
    %294 = math.tanh %293 : vector<8x32xf32>
    %295 = arith.mulf %290, %294 : vector<8x32xf32>
    %cst_62 = arith.constant dense<0.000000e+00> : vector<8x128xf32>
    %296 = tpu.matmul %275, %8, %cst_62 {dimension_numbers = #tpu.dot_dimension_numbers<[1], [0], [0], [1], [0, 0, 1, 1], [], []>} : vector<8x32xf32>, vector<32x128xf32>, vector<8x128xf32> -> vector<8x128xf32>
    %297 = vector.broadcast %10 : vector<1x128xf32> to vector<8x128xf32>
    %298 = arith.addf %296, %297 : vector<8x128xf32>
    %cst_63 = arith.constant dense<0.000000e+00> : vector<8x128xf32>
    %299 = tpu.matmul %295, %9, %cst_63 {dimension_numbers = #tpu.dot_dimension_numbers<[1], [0], [0], [1], [0, 0, 1, 1], [], []>} : vector<8x32xf32>, vector<32x128xf32>, vector<8x128xf32> -> vector<8x128xf32>
    %300 = arith.addf %298, %299 : vector<8x128xf32>
    %301 = arith.negf %300 : vector<8x128xf32>
    %302 = math.exp %301 : vector<8x128xf32>
    %cst_64 = arith.constant 1.000000e+00 : f32
    %303 = vector.broadcast %cst_64 : f32 to vector<8x128xf32>
    %304 = arith.addf %303, %302 : vector<8x128xf32>
    %305 = arith.divf %303, %304 : vector<8x128xf32>
    %306 = math.tanh %300 : vector<8x128xf32>
    %307 = vector.extract_strided_slice %305 {offsets = [0, 0], sizes = [8, 32], strides = [1, 1]} : vector<8x128xf32> to vector<8x32xf32>
    %308 = vector.extract_strided_slice %305 {offsets = [0, 32], sizes = [8, 32], strides = [1, 1]} : vector<8x128xf32> to vector<8x32xf32>
    %309 = vector.extract_strided_slice %306 {offsets = [0, 64], sizes = [8, 32], strides = [1, 1]} : vector<8x128xf32> to vector<8x32xf32>
    %310 = vector.extract_strided_slice %305 {offsets = [0, 96], sizes = [8, 32], strides = [1, 1]} : vector<8x128xf32> to vector<8x32xf32>
    %311 = arith.mulf %308, %293 : vector<8x32xf32>
    %312 = arith.mulf %307, %309 : vector<8x32xf32>
    %313 = arith.addf %311, %312 : vector<8x32xf32>
    %314 = math.tanh %313 : vector<8x32xf32>
    %315 = arith.mulf %310, %314 : vector<8x32xf32>
    %c0_65 = arith.constant 0 : index
    %c0_66 = arith.constant 0 : index
    %316 = vector.load %arg7[%c0_65, %c0_66] : memref<32x128xf32, #tpu.memory_space<vmem>>, vector<32x128xf32>
    %cst_67 = arith.constant dense<0.000000e+00> : vector<8x128xf32>
    %317 = tpu.matmul %315, %316, %cst_67 {dimension_numbers = #tpu.dot_dimension_numbers<[1], [0], [0], [1], [0, 0, 1, 1], [], []>} : vector<8x32xf32>, vector<32x128xf32>, vector<8x128xf32> -> vector<8x128xf32>
    %c0_68 = arith.constant 0 : index
    %c0_69 = arith.constant 0 : index
    %318 = vector.load %arg8[%c0_68, %c0_69] : memref<1x128xf32, #tpu.memory_space<vmem>>, vector<1x128xf32>
    %319 = vector.broadcast %318 : vector<1x128xf32> to vector<8x128xf32>
    %320 = arith.addf %317, %319 : vector<8x128xf32>
    %cst_70 = arith.constant 0.000000e+00 : f32
    %321 = vector.broadcast %cst_70 : f32 to vector<8x128xf32>
    %322 = arith.maximumf %320, %321 : vector<8x128xf32>
    %c0_71 = arith.constant 0 : index
    %c0_72 = arith.constant 0 : index
    %323 = vector.load %arg9[%c0_71, %c0_72] : memref<128x8xf32, #tpu.memory_space<vmem>>, vector<128x8xf32>
    %cst_73 = arith.constant dense<0.000000e+00> : vector<8x8xf32>
    %324 = tpu.matmul %322, %323, %cst_73 {dimension_numbers = #tpu.dot_dimension_numbers<[1], [0], [0], [1], [0, 0, 1, 1], [], []>} : vector<8x128xf32>, vector<128x8xf32>, vector<8x8xf32> -> vector<8x8xf32>
    %c0_74 = arith.constant 0 : index
    %c0_75 = arith.constant 0 : index
    %325 = vector.load %arg10[%c0_74, %c0_75] : memref<1x8xf32, #tpu.memory_space<vmem>>, vector<1x8xf32>
    %326 = vector.broadcast %325 : vector<1x8xf32> to vector<8x8xf32>
    %327 = arith.addf %324, %326 : vector<8x8xf32>
    %c0_76 = arith.constant 0 : index
    %c0_77 = arith.constant 0 : index
    %328 = vector.load %arg11[%c0_76, %c0_77] : memref<8x8xf32, #tpu.memory_space<vmem>>, vector<8x8xf32>
    tpu.vector_store %arg11[%c0_76, %c0_77], %327 {strides = array<i32>} : memref<8x8xf32, #tpu.memory_space<vmem>>, vector<8x8xf32>,
    return
  }
}

</mosaic_0001>

<bundles_post_ra>
// kernel: lstm_model_forward.1
= control target key start
LH: loop header
LB: loop body
LE: loop exit
PB: predicated region body
PF: predicated region fallthrough
CT: control target
= control target key end

     0   :  { %vm52_vm0 = vcmask 130048   ;;  %v1585_v7 = vmov 0.0   ;;  %s1586_s12 = smov 64   ;;  %s1587_s13 = smov 32   ;;  %vm140_vm5 = vcmask 261120   ;;  %s2111_s3 = inlined_call_operand.vmem [shape: f32[32,128], index: 3, kind: input, shape index: {}]   ;;  %s2112_s1 = inlined_call_operand.vmem [shape: f32[16,128], index: 1, kind: input, shape index: {}]   ;;  %s2113_s0 = inlined_call_operand.vmem [shape: f32[64,16], index: 0, kind: input, shape index: {}]   ;;  %s2114_s2 = inlined_call_operand.vmem [shape: f32[1,128], index: 2, kind: input, shape index: {}]   ;;  %s2115_s4 = inlined_call_operand.vmem [shape: f32[32,128], index: 4, kind: input, shape index: {}]   ;;  %s2116_s5 = inlined_call_operand.vmem [shape: f32[32,128], index: 5, kind: input, shape index: {}]   ;;  %s2117_s6 = inlined_call_operand.vmem [shape: f32[1,128], index: 6, kind: input, shape index: {}]   ;;  %s2118_s7 = inlined_call_operand.vmem [shape: f32[32,128], index: 7, kind: input, shape index: {}]   ;;  %s2119_s8 = inlined_call_operand.vmem [shape: f32[1,128], index: 8, kind: input, shape index: {}]   ;;  %s2120_s9 = inlined_call_operand.vmem [shape: f32[128,8], index: 9, kind: input, shape index: {}]   ;;  %s2121_s10 = inlined_call_operand.vmem [shape: f32[1,8], index: 10, kind: input, shape index: {}]   ;;  %s2122_s11 = inlined_call_operand.vmem [shape: f32[8,8], index: 11, kind: output, shape index: {}]  }
   0x1   :  { %v1651_v0 = vld [vmem:[%s2111_s3 + $0x18] sm:$0xff]  ;;  %v1656_v1 = vld [vmem:[%s2111_s3 + $0x10] sm:$0xff]  ;;  %v47_v2 = vld [vmem:[%s2112_s1 + $0x8] sm:$0xff] }
   0x2   :  { %156 = vmatpush.msra.mxu2 %v1651_v0  ;;  %v46_v3 = vld [vmem:[%s2112_s1] sm:$0xff]  ;;  %v1668_v4 = vld [vmem:[%s2111_s3 + $0x8] sm:$0xff]  ;;  %91 = vmatpush.msra.mxu0 %v47_v2  ;;  %v1706_v33 = vld [vmem:[%s2115_s4 + $0x18] sm:$0xff] }
   0x3   :  { %v38_v5 = vld [vmem:[%s2113_s0] sm:$0xff]  ;;  %v1711_v34 = vld [vmem:[%s2115_s4 + $0x10] sm:$0xff]  ;;  %281 = vmatpush.msra.mxu3 %v1706_v33  ;;  %v1717_v35 = vld [vmem:[%s2115_s4 + $0x8] sm:$0xff] }
   0x4   :  { %157 = vmatpush.msra.mxu2 %v1656_v1  ;;  %v1677_v6 = vld [vmem:[%s2111_s3] sm:$0xff]  ;;  %92 = vmatpush.msra.mxu0 %v46_v3  ;;  %v1731_v39 = vld [vmem:[%s2116_s5 + $0x18] sm:$0xff]  ;;  %v1736_v40 = vld [vmem:[%s2116_s5 + $0x10] sm:$0xff] }
   0x5   :  { %1397 = vmatmul.msk.f32.vlgmr.msra.gmra.mxu0 %vm52_vm0, %v38_v5  ;;  %v1694_v8 = vld [vmem:[%s2114_s2] ss:$0 sm:$0xff]  ;;  %282 = vmatpush.msra.mxu3 %v1711_v34  ;;  %v39_v41 = vld [vmem:[%s2113_s0 + $0x8] sm:$0xff] }
   0x6   :  { %158 = vmatpush.msra.mxu2 %v1668_v4  ;;  %v1723_v36 = vld [vmem:[%s2115_s4] sm:$0xff]  ;;  %v1746_v42 = vld [vmem:[%s2116_s5 + $0x8] sm:$0xff]  ;;  %448 = vmatpush.msrb.mxu0 %v1731_v39 }
   0x7   :  { %283 = vmatpush.msra.mxu3 %v1717_v35  ;;  %595 = vmatpush.msra.mxu1 %v1731_v39  ;;  %v1754_v43 = vld [vmem:[%s2116_s5] sm:$0xff] }
   0x8   :  { %159 = vmatpush.msra.mxu2 %v1677_v6  ;;  %449 = vmatpush.msrb.mxu0 %v1736_v40  ;;  %v1787_v50 = vld [vmem:[%s2117_s6] ss:$0 sm:$0xff] }
   0x9   :  { %160 = vmatmul.f32.vlgmr.msra.gmra.mxu2 %v1585_v7  ;;  %284 = vmatpush.msra.mxu3 %v1723_v36 }
   0xa   :  { %220 = vmatpush.msrb.mxu2 %v1651_v0  ;;  %596 = vmatpush.msra.mxu1 %v1736_v40 }
   0xb   :  { %301 = vmatpush.msrb.mxu3 %v1731_v39  ;;  %450 = vmatpush.msrb.mxu0 %v1746_v42 }
   0xc   :  { %221 = vmatpush.msrb.mxu2 %v1656_v1  ;;  %597 = vmatpush.msra.mxu1 %v1746_v42 }
   0xd   :  { %1398 = vmatmul.msk.f32.gmra.mxu0 %vm52_vm0, %v39_v41  ;;  %302 = vmatpush.msrb.mxu3 %v1736_v40 }
   0xe   :  { %222 = vmatpush.msrb.mxu2 %v1668_v4  ;;  %451 = vmatpush.msrb.mxu0 %v1754_v43 }
   0xf   :  { %303 = vmatpush.msrb.mxu3 %v1746_v42  ;;  %598 = vmatpush.msra.mxu1 %v1754_v43 }
  0x10   :  { %223 = vmatpush.msrb.mxu2 %v1677_v6 }
  0x11   :  { %304 = vmatpush.msrb.mxu3 %v1754_v43  ;;  %742 = vmatpush.msrb.mxu1 %v1731_v39 }
  0x12   :  { %365 = vmatpush.msra.mxu2 %v1651_v0 }
  0x13   :  { %743 = vmatpush.msrb.mxu1 %v1736_v40 }
  0x14   :  { %366 = vmatpush.msra.mxu2 %v1656_v1 }
  0x15   :  { %744 = vmatpush.msrb.mxu1 %v1746_v42 }
  0x16   :  { %367 = vmatpush.msra.mxu2 %v1668_v4 }
  0x17   :  { %745 = vmatpush.msrb.mxu1 %v1754_v43 }
  0x18   :  { %368 = vmatpush.msra.mxu2 %v1677_v6 }
  0x82   :  { %v94_v9 = vpop.f32.mrf.mxu0 }
  0x83   :  { %v95_v10 = vadd.f32 %v1694_v8, %v94_v9 }
  0x8a   :  { %v97_v45 = vpop.f32.mrf.mxu0 }
  0x8b   :  { %v98_v46 = vadd.f32 %v1694_v8, %v97_v45 }
  0x8c   :  { %v161_v11 = vpop.f32.mrf.mxu2 }
  0x8d   :  { %v164_v12 = vadd.f32 %v161_v11, %v95_v10 }
  0x8f   :  { %1451 = vtanh.f32 %v164_v12  ;;  %v1405_v14 = vmul.f32 -1.442695, %v164_v12 }
  0x91   :  { %1453 = vpow2.f32 %v1405_v14 }
  0x95   :  { %v1452_v13 = vpop.eup %1451 }
  0x96   :  { %187 = vrot.lane.b32.xlu0 %v1452_v13, %s1586_s12 }
  0x97   :  { %v1454_v15 = vpop.eup %1453 }
  0x98   :  { %v168_v16 = vadd.f32 1.0, %v1454_v15 }
  0x9a   :  { %1455 = vrcp.f32 %v168_v16  ;;  %v180_v22 = vand.u32 2147483648, %v168_v16  ;;  %vm174_vm2 = vweird.f32 %v168_v16  ;;  %v178_v23 = vand.u32 2147483647, %v168_v16 }
  0x9c   :  { %v181_v25 = vor.u32 1.1754944e-38, %v180_v22  ;;  %vm179_vm4 = vcmp.eq.f32.partialorder %v178_v23, 8.507059e+37 }
  0xa0   :  { %v1456_v17 = vpop.eup %1455 }
  0xa1   :  { %v170_v18 = vmul.f32 %v1456_v17, %v168_v16  ;;  %vm175_vm1 = vweird.f32 %v1456_v17 }
  0xa2   :  { %vm176_vm3 = vmor %vm174_vm2, %vm175_vm1 }
  0xa3   :  { %v171_v19 = vsub.f32 1.0, %v170_v18 }
  0xa5   :  { %v172_v20 = vmul.f32 %v1456_v17, %v171_v19 }
  0xa7   :  { %v173_v21 = vadd.f32 %v1456_v17, %v172_v20 }
  0xa9   :  { %v177_v24 = vsel %vm176_vm3, %v1456_v17, %v173_v21 }
  0xaa   :  { %v182_v27 = vsel %vm179_vm4, %v181_v25, %v177_v24 }
  0xab   :  { %v185_v29 = vmul.f32 0.0, %v182_v27 }
 0x108   :  { %v188_v26 = vpop.permute.xlu0 %187 }
 0x109   :  { %v190_v28 = vmul.f32 %v188_v26, %v182_v27 }
 0x10b   :  { %192 = vrot.lane.b32.xlu0 %v190_v28, %s1587_s13 }
 0x17d   :  { %v193_v30 = vpop.permute.xlu0 %192 }
 0x17e   :  { %v1699_v31 = vadd.f32 %v193_v30, %v185_v29 }
 0x180   :  { %1457 = vtanh.f32 %v1699_v31 }
 0x186   :  { %v1458_v32 = vpop.eup %1457 }
 0x187   :  { %198 = vrot.lane.b32.xlu1 %v1458_v32, %s1586_s12 }
 0x1f9   :  { %v199_v37 = vpop.permute.xlu1 %198 }
 0x1fa   :  { %v201_v38 = vmul.f32 %v199_v37, %v182_v27 }
 0x1fc   :  { %204 = vrot.lane.b32.xlu1 %v201_v38, %s1587_s13 }
 0x26e   :  { %v205_v44 = vpop.permute.xlu1 %204 }
 0x26f   :  { %1406 = vmatmul.msk.f32.vlgmr.msrb.gmra.mxu2 %vm140_vm5, %v205_v44  ;;  %1408 = vmatmul.msk.f32.vlgmr.msra.gmra.mxu3 %vm140_vm5, %v205_v44 }
 0x270   :  { %423 = vmatpush.msra.mxu3 %v1706_v33  ;;  %512 = vmatpush.msrb.mxu2 %v1651_v0 }
 0x272   :  { %424 = vmatpush.msra.mxu3 %v1711_v34  ;;  %513 = vmatpush.msrb.mxu2 %v1656_v1 }
 0x274   :  { %425 = vmatpush.msra.mxu3 %v1717_v35  ;;  %514 = vmatpush.msrb.mxu2 %v1668_v4 }
 0x276   :  { %426 = vmatpush.msra.mxu3 %v1723_v36  ;;  %515 = vmatpush.msrb.mxu2 %v1677_v6 }
 0x277   :  { %305 = vmatmul.f32.vlgmr.msrb.gmra.mxu3 %v1585_v7 }
 0x278   :  { %570 = vmatpush.msrb.mxu3 %v1706_v33 }
 0x27a   :  { %571 = vmatpush.msrb.mxu3 %v1711_v34 }
 0x27c   :  { %572 = vmatpush.msrb.mxu3 %v1717_v35 }
 0x27e   :  { %573 = vmatpush.msrb.mxu3 %v1723_v36 }
 0x2f2   :  { %v225_v47 = vpop.f32.mrf.mxu2  ;;  %v286_v48 = vpop.f32.mrf.mxu3 }
 0x2f3   :  { %v228_v49 = vadd.f32 %v225_v47, %v98_v46  ;;  %v287_v51 = vadd.f32 %v1787_v50, %v286_v48  ;;  %v41_v46 = vld [vmem:[%s2113_s0 + $0x18] sm:$0xff]  ;;  %v42_v47 = vld [vmem:[%s2113_s0 + $0x20] sm:$0xff]  ;;  %v43_v48 = vld [vmem:[%s2113_s0 + $0x28] sm:$0xff] }
 0x2f5   :  { %1459 = vtanh.f32 %v228_v49  ;;  %v1407_v56 = vmul.f32 -1.442695, %v228_v49 }
 0x2fa   :  { %v306_v52 = vpop.f32.mrf.mxu3 }
 0x2fb   :  { %v1460_v53 = vpop.eup %1459  ;;  %v309_v54 = vadd.f32 %v306_v52, %v287_v51  ;;  %v44_v52 = vld [vmem:[%s2113_s0 + $0x30] sm:$0xff] }
 0x2fc   :  { %251 = vrot.lane.b32.xlu2 %v1460_v53, %s1586_s12  ;;  %v45_v53 = vld [vmem:[%s2113_s0 + $0x38] sm:$0xff] }
 0x2fd   :  { %1461 = vtanh.f32 %v309_v54  ;;  %v1409_v57 = vmul.f32 -1.442695, %v309_v54 }
 0x2fe   :  { %1463 = vpow2.f32 %v1407_v56 }
 0x2ff   :  { %1465 = vpow2.f32 %v1409_v57 }
 0x303   :  { %v1462_v55 = vpop.eup %1461 }
 0x304   :  { %332 = vrot.lane.b32.xlu2 %v1462_v55, %s1586_s12  ;;  %v1464_v58 = vpop.eup %1463 }
 0x305   :  { %v232_v59 = vadd.f32 1.0, %v1464_v58  ;;  %v1466_v60 = vpop.eup %1465 }
 0x306   :  { %v313_v61 = vadd.f32 1.0, %v1466_v60 }
 0x307   :  { %1467 = vrcp.f32 %v232_v59  ;;  %v244_v11 = vand.u32 2147483648, %v232_v59  ;;  %vm238_vm7 = vweird.f32 %v232_v59  ;;  %v242_v12 = vand.u32 2147483647, %v232_v59 }
 0x308   :  { %1469 = vrcp.f32 %v313_v61  ;;  %v325_v20 = vand.u32 2147483648, %v313_v61  ;;  %vm319_vm11 = vweird.f32 %v313_v61  ;;  %v323_v21 = vand.u32 2147483647, %v313_v61 }
 0x309   :  { %v245_v15 = vor.u32 1.1754944e-38, %v244_v11  ;;  %vm243_vm9 = vcmp.eq.f32.partialorder %v242_v12, 8.507059e+37 }
 0x30a   :  { %v326_v23 = vor.u32 1.1754944e-38, %v325_v20  ;;  %vm324_vm13 = vcmp.eq.f32.partialorder %v323_v21, 8.507059e+37 }
 0x30d   :  { %v1468_v62 = vpop.eup %1467 }
 0x30e   :  { %v234_v63 = vmul.f32 %v1468_v62, %v232_v59  ;;  %v1470_v3 = vpop.eup %1469  ;;  %vm239_vm6 = vweird.f32 %v1468_v62 }
 0x30f   :  { %v315_v7 = vmul.f32 %v1470_v3, %v313_v61  ;;  %vm240_vm8 = vmor %vm238_vm7, %vm239_vm6  ;;  %vm320_vm10 = vweird.f32 %v1470_v3 }
 0x310   :  { %v235_v2 = vsub.f32 1.0, %v234_v63  ;;  %vm321_vm12 = vmor %vm319_vm11, %vm320_vm10 }
 0x311   :  { %v316_v10 = vsub.f32 1.0, %v315_v7 }
 0x312   :  { %v236_v5 = vmul.f32 %v1468_v62, %v235_v2 }
 0x313   :  { %v317_v14 = vmul.f32 %v1470_v3, %v316_v10 }
 0x314   :  { %v237_v9 = vadd.f32 %v1468_v62, %v236_v5 }
 0x315   :  { %v318_v19 = vadd.f32 %v1470_v3, %v317_v14 }
 0x316   :  { %v241_v13 = vsel %vm240_vm8, %v1468_v62, %v237_v9 }
 0x317   :  { %v246_v17 = vsel %vm243_vm9, %v245_v15, %v241_v13  ;;  %v322_v22 = vsel %vm321_vm12, %v1470_v3, %v318_v19 }
 0x318   :  { %v327_v24 = vsel %vm324_vm13, %v326_v23, %v322_v22  ;;  %v249_v27 = vmul.f32 %v246_v17, %v1699_v31  ;;  %v40_v31 = vld [vmem:[%s2113_s0 + $0x10] sm:$0xff] }
 0x319   :  { %v330_v30 = vmul.f32 0.0, %v327_v24  ;;  %1399 = vmatmul.msk.f32.gmra.mxu0 %vm52_vm0, %v40_v31 }
 0x321   :  { %1400 = vmatmul.msk.f32.gmra.mxu0 %vm52_vm0, %v41_v46 }
 0x329   :  { %1401 = vmatmul.msk.f32.gmra.mxu0 %vm52_vm0, %v42_v47 }
 0x331   :  { %1402 = vmatmul.msk.f32.gmra.mxu0 %vm52_vm0, %v43_v48 }
 0x339   :  { %1403 = vmatmul.msk.f32.gmra.mxu0 %vm52_vm0, %v44_v52 }
 0x341   :  { %1404 = vmatmul.msk.f32.gmra.mxu0 %vm52_vm0, %v45_v53 }
 0x356   :  { %v252_v16 = vpop.permute.xlu2 %251 }
 0x357   :  { %v254_v18 = vmul.f32 %v252_v16, %v246_v17 }
 0x359   :  { %256 = vrot.lane.b32.xlu0 %v254_v18, %s1587_s13 }
 0x35e   :  { %v333_v25 = vpop.permute.xlu2 %332 }
 0x35f   :  { %v335_v26 = vmul.f32 %v333_v25, %v327_v24 }
 0x361   :  { %337 = vrot.lane.b32.xlu1 %v335_v26, %s1587_s13 }
 0x396   :  { %v100_v56 = vpop.f32.mrf.mxu0 }
 0x397   :  { %v101_v62 = vadd.f32 %v1694_v8, %v100_v56 }
 0x39e   :  { %v1840_v57 = vpop.f32.mrf.mxu0 }
 0x3a6   :  { %v1842_v58 = vpop.f32.mrf.mxu0 }
 0x3ae   :  { %v1844_v59 = vpop.f32.mrf.mxu0 }
 0x3b6   :  { %v1846_v60 = vpop.f32.mrf.mxu0 }
 0x3be   :  { %v1848_v61 = vpop.f32.mrf.mxu0 }
 0x3cb   :  { %v257_v28 = vpop.permute.xlu0 %256 }
 0x3cc   :  { %v1795_v29 = vadd.f32 %v257_v28, %v249_v27 }
 0x3ce   :  { %1471 = vtanh.f32 %v1795_v29 }
 0x3d3   :  { %v338_v32 = vpop.permute.xlu1 %337 }
 0x3d4   :  { %v1472_v37 = vpop.eup %1471  ;;  %v1798_v38 = vadd.f32 %v338_v32, %v330_v30 }
 0x3d5   :  { %262 = vrot.lane.b32.xlu2 %v1472_v37, %s1586_s12 }
 0x3d6   :  { %1473 = vtanh.f32 %v1798_v38 }
 0x3dc   :  { %v1474_v41 = vpop.eup %1473 }
 0x3dd   :  { %343 = vrot.lane.b32.xlu0 %v1474_v41, %s1586_s12 }
 0x42f   :  { %v263_v44 = vpop.permute.xlu2 %262 }
 0x430   :  { %v265_v45 = vmul.f32 %v263_v44, %v246_v17 }
 0x432   :  { %349 = vrot.lane.b32.xlu1 %v265_v45, %s1587_s13 }
 0x44f   :  { %v344_v49 = vpop.permute.xlu0 %343 }
 0x450   :  { %v346_v51 = vmul.f32 %v344_v49, %v327_v24 }
 0x452   :  { %432 = vrot.lane.b32.xlu2 %v346_v51, %s1587_s13 }
 0x4a4   :  { %v350_v54 = vpop.permute.xlu1 %349 }
 0x4a5   :  { %1410 = vmatmul.msk.f32.vlgmr.msra.gmra.mxu2 %vm140_vm5, %v350_v54  ;;  %1412 = vmatmul.msk.f32.vlgmr.msra.gmra.mxu3 %vm140_vm5, %v350_v54 }
 0x4a6   :  { %659 = vmatpush.msra.mxu2 %v1651_v0  ;;  %717 = vmatpush.msra.mxu3 %v1706_v33 }
 0x4a8   :  { %660 = vmatpush.msra.mxu2 %v1656_v1  ;;  %718 = vmatpush.msra.mxu3 %v1711_v34 }
 0x4aa   :  { %661 = vmatpush.msra.mxu2 %v1668_v4  ;;  %719 = vmatpush.msra.mxu3 %v1717_v35 }
 0x4ac   :  { %v433_v55 = vpop.permute.xlu2 %432  ;;  %662 = vmatpush.msra.mxu2 %v1677_v6  ;;  %720 = vmatpush.msra.mxu3 %v1723_v36 }
 0x4ad   :  { %1413 = vmatmul.msk.f32.vlgmr.msrb.gmra.mxu0 %vm140_vm5, %v433_v55 }
 0x528   :  { %v370_v63 = vpop.f32.mrf.mxu2  ;;  %v428_v2 = vpop.f32.mrf.mxu3 }
 0x529   :  { %v373_v3 = vadd.f32 %v370_v63, %v101_v62  ;;  %v429_v5 = vadd.f32 %v1787_v50, %v428_v2 }
 0x52a   :  { %v453_v7 = vpop.f32.mrf.mxu0 }
 0x52b   :  { %1475 = vtanh.f32 %v373_v3  ;;  %v456_v9 = vadd.f32 %v453_v7, %v429_v5  ;;  %v1411_v12 = vmul.f32 -1.442695, %v373_v3 }
 0x52d   :  { %1477 = vtanh.f32 %v456_v9  ;;  %v1414_v13 = vmul.f32 -1.442695, %v456_v9 }
 0x52e   :  { %1479 = vpow2.f32 %v1411_v12 }
 0x52f   :  { %1481 = vpow2.f32 %v1414_v13 }
 0x531   :  { %v1476_v10 = vpop.eup %1475 }
 0x532   :  { %396 = vrot.lane.b32.xlu0 %v1476_v10, %s1586_s12 }
 0x533   :  { %v1478_v11 = vpop.eup %1477 }
 0x534   :  { %479 = vrot.lane.b32.xlu1 %v1478_v11, %s1586_s12  ;;  %v1480_v14 = vpop.eup %1479  ;;  %v104_v11 = vadd.f32 %v1694_v8, %v1840_v57 }
 0x535   :  { %v1482_v15 = vpop.eup %1481  ;;  %v377_v16 = vadd.f32 1.0, %v1480_v14 }
 0x536   :  { %v460_v17 = vadd.f32 1.0, %v1482_v15 }
 0x537   :  { %1483 = vrcp.f32 %v377_v16  ;;  %v389_v27 = vand.u32 2147483648, %v377_v16  ;;  %vm383_vm15 = vweird.f32 %v377_v16  ;;  %v387_v28 = vand.u32 2147483647, %v377_v16 }
 0x538   :  { %1485 = vrcp.f32 %v460_v17  ;;  %v472_v37 = vand.u32 2147483648, %v460_v17  ;;  %vm466_vm2 = vweird.f32 %v460_v17  ;;  %v470_v44 = vand.u32 2147483647, %v460_v17 }
 0x539   :  { %v390_v41 = vor.u32 1.1754944e-38, %v389_v27  ;;  %vm388_vm3 = vcmp.eq.f32.partialorder %v387_v28, 8.507059e+37 }
 0x53a   :  { %v473_v48 = vor.u32 1.1754944e-38, %v472_v37  ;;  %vm471_vm6 = vcmp.eq.f32.partialorder %v470_v44, 8.507059e+37 }
 0x53d   :  { %v1484_v18 = vpop.eup %1483 }
 0x53e   :  { %v1486_v19 = vpop.eup %1485  ;;  %v379_v20 = vmul.f32 %v1484_v18, %v377_v16  ;;  %vm384_vm14 = vweird.f32 %v1484_v18 }
 0x53f   :  { %v462_v21 = vmul.f32 %v1486_v19, %v460_v17  ;;  %vm385_vm0 = vmor %vm383_vm15, %vm384_vm14  ;;  %vm467_vm1 = vweird.f32 %v1486_v19 }
 0x540   :  { %v380_v22 = vsub.f32 1.0, %v379_v20  ;;  %vm468_vm4 = vmor %vm466_vm2, %vm467_vm1 }
 0x541   :  { %v463_v23 = vsub.f32 1.0, %v462_v21 }
 0x542   :  { %v381_v24 = vmul.f32 %v1484_v18, %v380_v22 }
 0x543   :  { %v464_v25 = vmul.f32 %v1486_v19, %v463_v23 }
 0x544   :  { %v382_v26 = vadd.f32 %v1484_v18, %v381_v24 }
 0x545   :  { %v465_v30 = vadd.f32 %v1486_v19, %v464_v25 }
 0x546   :  { %v386_v32 = vsel %vm385_vm0, %v1484_v18, %v382_v26 }
 0x547   :  { %v391_v31 = vsel %vm388_vm3, %v390_v41, %v386_v32  ;;  %v469_v46 = vsel %vm468_vm4, %v1486_v19, %v465_v30 }
 0x548   :  { %v474_v51 = vsel %vm471_vm6, %v473_v48, %v469_v46  ;;  %v394_v53 = vmul.f32 %v391_v31, %v1795_v29 }
 0x549   :  { %v477_v62 = vmul.f32 %v474_v51, %v1798_v38 }
 0x5a4   :  { %v397_v45 = vpop.permute.xlu0 %396 }
 0x5a5   :  { %v399_v47 = vmul.f32 %v397_v45, %v391_v31 }
 0x5a6   :  { %v480_v49 = vpop.permute.xlu1 %479 }
 0x5a7   :  { %401 = vrot.lane.b32.xlu2 %v399_v47, %s1587_s13  ;;  %v482_v52 = vmul.f32 %v480_v49, %v474_v51 }
 0x5a9   :  { %484 = vrot.lane.b32.xlu0 %v482_v52, %s1587_s13 }
 0x601   :  { %v402_v54 = vpop.permute.xlu2 %401 }
 0x602   :  { %v1857_v55 = vadd.f32 %v402_v54, %v394_v53 }
 0x604   :  { %1487 = vtanh.f32 %v1857_v55 }
 0x60a   :  { %v1488_v56 = vpop.eup %1487 }
 0x60b   :  { %407 = vrot.lane.b32.xlu1 %v1488_v56, %s1586_s12 }
 0x61b   :  { %v485_v63 = vpop.permute.xlu0 %484 }
 0x61c   :  { %v1862_v2 = vadd.f32 %v485_v63, %v477_v62 }
 0x61e   :  { %1489 = vtanh.f32 %v1862_v2 }
 0x624   :  { %v1490_v3 = vpop.eup %1489 }
 0x625   :  { %490 = vrot.lane.b32.xlu2 %v1490_v3, %s1586_s12 }
 0x67d   :  { %v408_v5 = vpop.permute.xlu1 %407 }
 0x67e   :  { %v410_v29 = vmul.f32 %v408_v5, %v391_v31 }
 0x67f   :  { %v491_v7 = vpop.permute.xlu2 %490 }
 0x680   :  { %496 = vrot.lane.b32.xlu0 %v410_v29, %s1587_s13  ;;  %v493_v9 = vmul.f32 %v491_v7, %v474_v51 }
 0x682   :  { %579 = vrot.lane.b32.xlu1 %v493_v9, %s1587_s13 }
 0x6f2   :  { %v497_v10 = vpop.permute.xlu0 %496 }
 0x6f3   :  { %1415 = vmatmul.msk.f32.vlgmr.msrb.gmra.mxu2 %vm140_vm5, %v497_v10  ;;  %1417 = vmatmul.msk.f32.vlgmr.msrb.gmra.mxu3 %vm140_vm5, %v497_v10 }
 0x6f4   :  { %806 = vmatpush.msrb.mxu2 %v1651_v0  ;;  %864 = vmatpush.msrb.mxu3 %v1706_v33  ;;  %v580_v38 = vpop.permute.xlu1 %579 }
 0x6f5   :  { %1418 = vmatmul.msk.f32.vlgmr.msra.gmra.mxu1 %vm140_vm5, %v580_v38 }
 0x6f6   :  { %807 = vmatpush.msrb.mxu2 %v1656_v1  ;;  %889 = vmatpush.msra.mxu1 %v1731_v39 }
 0x6f7   :  { %865 = vmatpush.msrb.mxu3 %v1711_v34 }
 0x6f8   :  { %808 = vmatpush.msrb.mxu2 %v1668_v4  ;;  %890 = vmatpush.msra.mxu1 %v1736_v40 }
 0x6f9   :  { %866 = vmatpush.msrb.mxu3 %v1717_v35 }
 0x6fa   :  { %809 = vmatpush.msrb.mxu2 %v1677_v6  ;;  %891 = vmatpush.msra.mxu1 %v1746_v42 }
 0x6fb   :  { %867 = vmatpush.msrb.mxu3 %v1723_v36 }
 0x6fc   :  { %892 = vmatpush.msra.mxu1 %v1754_v43 }
 0x772   :  { %v600_v16 = vpop.f32.mrf.mxu1 }
 0x776   :  { %v517_v12 = vpop.f32.mrf.mxu2  ;;  %v575_v13 = vpop.f32.mrf.mxu3 }
 0x777   :  { %v520_v14 = vadd.f32 %v517_v12, %v104_v11  ;;  %v576_v15 = vadd.f32 %v1787_v50, %v575_v13 }
 0x779   :  { %1491 = vtanh.f32 %v520_v14  ;;  %v603_v17 = vadd.f32 %v600_v16, %v576_v15  ;;  %v1416_v20 = vmul.f32 -1.442695, %v520_v14 }
 0x77b   :  { %1493 = vtanh.f32 %v603_v17  ;;  %v1419_v24 = vmul.f32 -1.442695, %v603_v17 }
 0x77c   :  { %1495 = vpow2.f32 %v1416_v20 }
 0x77f   :  { %v1492_v18 = vpop.eup %1491 }
 0x780   :  { %543 = vrot.lane.b32.xlu2 %v1492_v18, %s1586_s12  ;;  %v107_v18 = vadd.f32 %v1694_v8, %v1842_v58 }
 0x781   :  { %v1494_v19 = vpop.eup %1493 }
 0x782   :  { %626 = vrot.lane.b32.xlu0 %v1494_v19, %s1586_s12  ;;  %v1496_v21 = vpop.eup %1495 }
 0x783   :  { %v524_v22 = vadd.f32 1.0, %v1496_v21 }
 0x785   :  { %1497 = vrcp.f32 %v524_v22  ;;  %v536_v30 = vand.u32 2147483648, %v524_v22  ;;  %vm530_vm8 = vweird.f32 %v524_v22  ;;  %v534_v37 = vand.u32 2147483647, %v524_v22 }
 0x786   :  { %1499 = vpow2.f32 %v1419_v24 }
 0x787   :  { %v537_v44 = vor.u32 1.1754944e-38, %v536_v30  ;;  %vm535_vm10 = vcmp.eq.f32.partialorder %v534_v37, 8.507059e+37 }
 0x78b   :  { %v1498_v57 = vpop.eup %1497 }
 0x78c   :  { %v526_v23 = vmul.f32 %v1498_v57, %v524_v22  ;;  %v1500_v27 = vpop.eup %1499  ;;  %vm531_vm7 = vweird.f32 %v1498_v57 }
 0x78d   :  { %v607_v32 = vadd.f32 1.0, %v1500_v27  ;;  %vm532_vm9 = vmor %vm530_vm8, %vm531_vm7 }
 0x78e   :  { %v527_v25 = vsub.f32 1.0, %v526_v23 }
 0x78f   :  { %1501 = vrcp.f32 %v607_v32  ;;  %v619_v53 = vand.u32 2147483648, %v607_v32  ;;  %vm613_vm12 = vweird.f32 %v607_v32  ;;  %v617_v54 = vand.u32 2147483647, %v607_v32 }
 0x790   :  { %v528_v26 = vmul.f32 %v1498_v57, %v527_v25 }
 0x791   :  { %v620_v62 = vor.u32 1.1754944e-38, %v619_v53  ;;  %vm618_vm14 = vcmp.eq.f32.partialorder %v617_v54, 8.507059e+37 }
 0x792   :  { %v529_v28 = vadd.f32 %v1498_v57, %v528_v26 }
 0x794   :  { %v533_v41 = vsel %vm532_vm9, %v1498_v57, %v529_v28 }
 0x795   :  { %v538_v45 = vsel %vm535_vm10, %v537_v44, %v533_v41  ;;  %v1502_v47 = vpop.eup %1501 }
 0x796   :  { %v609_v48 = vmul.f32 %v1502_v47, %v607_v32  ;;  %vm614_vm11 = vweird.f32 %v1502_v47  ;;  %v541_v29 = vmul.f32 %v538_v45, %v1857_v55 }
 0x797   :  { %vm615_vm13 = vmor %vm613_vm12, %vm614_vm11 }
 0x798   :  { %v610_v49 = vsub.f32 1.0, %v609_v48 }
 0x79a   :  { %v611_v51 = vmul.f32 %v1502_v47, %v610_v49 }
 0x79c   :  { %v612_v52 = vadd.f32 %v1502_v47, %v611_v51 }
 0x79e   :  { %v616_v56 = vsel %vm615_vm13, %v1502_v47, %v612_v52 }
 0x79f   :  { %v621_v3 = vsel %vm618_vm14, %v620_v62, %v616_v56 }
 0x7a0   :  { %v624_v10 = vmul.f32 %v621_v3, %v1862_v2 }
 0x7da   :  { %v544_v31 = vpop.permute.xlu2 %543 }
 0x7db   :  { %v546_v46 = vmul.f32 %v544_v31, %v538_v45 }
 0x7dd   :  { %548 = vrot.lane.b32.xlu1 %v546_v46, %s1587_s13 }
 0x7f4   :  { %v627_v63 = vpop.permute.xlu0 %626 }
 0x7f5   :  { %v629_v5 = vmul.f32 %v627_v63, %v621_v3 }
 0x7f7   :  { %631 = vrot.lane.b32.xlu2 %v629_v5, %s1587_s13 }
 0x84f   :  { %v549_v7 = vpop.permute.xlu1 %548 }
 0x850   :  { %v1891_v9 = vadd.f32 %v549_v7, %v541_v29 }
 0x851   :  { %v632_v38 = vpop.permute.xlu2 %631 }
 0x852   :  { %1503 = vtanh.f32 %v1891_v9  ;;  %v1895_v11 = vadd.f32 %v632_v38, %v624_v10 }
 0x854   :  { %1505 = vtanh.f32 %v1895_v11 }
 0x858   :  { %v1504_v12 = vpop.eup %1503 }
 0x859   :  { %554 = vrot.lane.b32.xlu0 %v1504_v12, %s1586_s12 }
 0x85a   :  { %v1506_v13 = vpop.eup %1505 }
 0x85b   :  { %637 = vrot.lane.b32.xlu1 %v1506_v13, %s1586_s12 }
 0x8cb   :  { %v555_v14 = vpop.permute.xlu0 %554 }
 0x8cc   :  { %v557_v55 = vmul.f32 %v555_v14, %v538_v45 }
 0x8cd   :  { %v638_v15 = vpop.permute.xlu1 %637 }
 0x8ce   :  { %643 = vrot.lane.b32.xlu2 %v557_v55, %s1587_s13  ;;  %v640_v16 = vmul.f32 %v638_v15, %v621_v3 }
 0x8d0   :  { %726 = vrot.lane.b32.xlu0 %v640_v16, %s1587_s13 }
 0x928   :  { %v644_v2 = vpop.permute.xlu2 %643 }
 0x929   :  { %1420 = vmatmul.msk.f32.vlgmr.msra.gmra.mxu2 %vm140_vm5, %v644_v2  ;;  %1422 = vmatmul.msk.f32.vlgmr.msra.gmra.mxu3 %vm140_vm5, %v644_v2 }
 0x92a   :  { %953 = vmatpush.msra.mxu2 %v1651_v0  ;;  %1011 = vmatpush.msra.mxu3 %v1706_v33 }
 0x92c   :  { %954 = vmatpush.msra.mxu2 %v1656_v1  ;;  %1012 = vmatpush.msra.mxu3 %v1711_v34 }
 0x92e   :  { %955 = vmatpush.msra.mxu2 %v1668_v4  ;;  %1013 = vmatpush.msra.mxu3 %v1717_v35 }
 0x930   :  { %956 = vmatpush.msra.mxu2 %v1677_v6  ;;  %1014 = vmatpush.msra.mxu3 %v1723_v36 }
 0x942   :  { %v727_v17 = vpop.permute.xlu0 %726 }
 0x943   :  { %1423 = vmatmul.msk.f32.vlgmr.msrb.gmra.mxu1 %vm140_vm5, %v727_v17 }
 0x944   :  { %1036 = vmatpush.msrb.mxu1 %v1731_v39 }
 0x946   :  { %1037 = vmatpush.msrb.mxu1 %v1736_v40 }
 0x948   :  { %1038 = vmatpush.msrb.mxu1 %v1746_v42 }
 0x94a   :  { %1039 = vmatpush.msrb.mxu1 %v1754_v43 }
 0x9ac   :  { %v664_v19 = vpop.f32.mrf.mxu2  ;;  %v722_v22 = vpop.f32.mrf.mxu3 }
 0x9ad   :  { %v667_v20 = vadd.f32 %v664_v19, %v107_v18  ;;  %v723_v57 = vadd.f32 %v1787_v50, %v722_v22 }
 0x9af   :  { %1507 = vtanh.f32 %v667_v20  ;;  %v1421_v27 = vmul.f32 -1.442695, %v667_v20 }
 0x9b5   :  { %v1508_v21 = vpop.eup %1507 }
 0x9b6   :  { %690 = vrot.lane.b32.xlu1 %v1508_v21, %s1586_s12 }
 0x9c0   :  { %v747_v23 = vpop.f32.mrf.mxu1 }
 0x9c1   :  { %v750_v24 = vadd.f32 %v747_v23, %v723_v57 }
 0x9c3   :  { %1509 = vtanh.f32 %v750_v24  ;;  %v1424_v26 = vmul.f32 -1.442695, %v750_v24 }
 0x9c5   :  { %1511 = vpow2.f32 %v1424_v26 }
 0x9c6   :  { %1513 = vpow2.f32 %v1421_v27 }
 0x9c9   :  { %v1510_v25 = vpop.eup %1509 }
 0x9ca   :  { %773 = vrot.lane.b32.xlu2 %v1510_v25, %s1586_s12 }
 0x9cb   :  { %v1512_v58 = vpop.eup %1511 }
 0x9cc   :  { %v1514_v28 = vpop.eup %1513  ;;  %v754_v30 = vadd.f32 1.0, %v1512_v58 }
 0x9cd   :  { %v671_v32 = vadd.f32 1.0, %v1514_v28 }
 0x9ce   :  { %1515 = vrcp.f32 %v754_v30  ;;  %v766_v51 = vand.u32 2147483648, %v754_v30  ;;  %vm760_vm0 = vweird.f32 %v754_v30  ;;  %v764_v52 = vand.u32 2147483647, %v754_v30 }
 0x9cf   :  { %1517 = vrcp.f32 %v671_v32  ;;  %v683_v56 = vand.u32 2147483648, %v671_v32  ;;  %vm677_vm3 = vweird.f32 %v671_v32  ;;  %v681_v63 = vand.u32 2147483647, %v671_v32 }
 0x9d0   :  { %v767_v62 = vor.u32 1.1754944e-38, %v766_v51  ;;  %vm765_vm4 = vcmp.eq.f32.partialorder %v764_v52, 8.507059e+37 }
 0x9d1   :  { %v684_v10 = vor.u32 1.1754944e-38, %v683_v56  ;;  %vm682_vm7 = vcmp.eq.f32.partialorder %v681_v63, 8.507059e+37 }
 0x9d4   :  { %v1516_v37 = vpop.eup %1515 }
 0x9d5   :  { %v1518_v41 = vpop.eup %1517  ;;  %v756_v44 = vmul.f32 %v1516_v37, %v754_v30  ;;  %vm761_vm15 = vweird.f32 %v1516_v37 }
 0x9d6   :  { %v673_v45 = vmul.f32 %v1518_v41, %v671_v32  ;;  %vm762_vm1 = vmor %vm760_vm0, %vm761_vm15  ;;  %vm678_vm2 = vweird.f32 %v1518_v41 }
 0x9d7   :  { %v757_v31 = vsub.f32 1.0, %v756_v44  ;;  %vm679_vm6 = vmor %vm677_vm3, %vm678_vm2 }
 0x9d8   :  { %v674_v46 = vsub.f32 1.0, %v673_v45 }
 0x9d9   :  { %v758_v47 = vmul.f32 %v1516_v37, %v757_v31 }
 0x9da   :  { %v675_v48 = vmul.f32 %v1518_v41, %v674_v46 }
 0x9db   :  { %v759_v49 = vadd.f32 %v1516_v37, %v758_v47 }
 0x9dc   :  { %v676_v53 = vadd.f32 %v1518_v41, %v675_v48 }
 0x9dd   :  { %v763_v54 = vsel %vm762_vm1, %v1516_v37, %v759_v49 }
 0x9de   :  { %v768_v5 = vsel %vm765_vm4, %v767_v62, %v763_v54  ;;  %v680_v29 = vsel %vm679_vm6, %v1518_v41, %v676_v53 }
 0x9df   :  { %v685_v12 = vsel %vm682_vm7, %v684_v10, %v680_v29  ;;  %v771_v14 = vmul.f32 %v768_v5, %v1895_v11 }
 0x9e0   :  { %v688_v16 = vmul.f32 %v685_v12, %v1891_v9 }
 0xa24   :  { %v774_v3 = vpop.permute.xlu2 %773 }
 0xa25   :  { %v776_v7 = vmul.f32 %v774_v3, %v768_v5 }
 0xa27   :  { %778 = vrot.lane.b32.xlu1 %v776_v7, %s1587_s13 }
 0xa28   :  { %v691_v38 = vpop.permute.xlu1 %690 }
 0xa29   :  { %v693_v13 = vmul.f32 %v691_v38, %v685_v12 }
 0xa2b   :  { %695 = vrot.lane.b32.xlu0 %v693_v13, %s1587_s13 }
 0xa99   :  { %v779_v55 = vpop.permute.xlu1 %778 }
 0xa9a   :  { %v1925_v15 = vadd.f32 %v779_v55, %v771_v14 }
 0xa9c   :  { %1519 = vtanh.f32 %v1925_v15 }
 0xa9d   :  { %v696_v2 = vpop.permute.xlu0 %695 }
 0xa9e   :  { %v1929_v17 = vadd.f32 %v696_v2, %v688_v16 }
 0xaa0   :  { %1521 = vtanh.f32 %v1929_v17 }
 0xaa2   :  { %v1520_v18 = vpop.eup %1519 }
 0xaa3   :  { %784 = vrot.lane.b32.xlu0 %v1520_v18, %s1586_s12 }
 0xaa6   :  { %v1522_v19 = vpop.eup %1521 }
 0xaa7   :  { %701 = vrot.lane.b32.xlu2 %v1522_v19, %s1586_s12 }
 0xb01   :  { %v702_v20 = vpop.permute.xlu2 %701 }
 0xb02   :  { %v704_v11 = vmul.f32 %v702_v20, %v685_v12 }
 0xb04   :  { %790 = vrot.lane.b32.xlu1 %v704_v11, %s1587_s13 }
 0xb15   :  { %v785_v21 = vpop.permute.xlu0 %784 }
 0xb16   :  { %v787_v22 = vmul.f32 %v785_v21, %v768_v5 }
 0xb18   :  { %873 = vrot.lane.b32.xlu2 %v787_v22, %s1587_s13  ;;  %v1580_v22 = vld [vmem:[%s2115_s4 + $0x10] sm:$0xff] }
 0xb72   :  { %v874_v9 = vpop.permute.xlu2 %873 }
 0xb73   :  { %1428 = vmatmul.msk.f32.vlgmr.msra.gmra.mxu1 %vm140_vm5, %v874_v9  ;;  %v1582_v9 = vld [vmem:[%s2115_s4] sm:$0xff] }
 0xb74   :  { %1183 = vmatpush.msra.mxu1 %v1731_v39 }
 0xb76   :  { %v791_v57 = vpop.permute.xlu1 %790  ;;  %1184 = vmatpush.msra.mxu1 %v1736_v40 }
 0xb77   :  { %1425 = vmatmul.msk.f32.vlgmr.msrb.gmra.mxu2 %vm140_vm5, %v791_v57  ;;  %1427 = vmatmul.msk.f32.vlgmr.msrb.gmra.mxu3 %vm140_vm5, %v791_v57 }
 0xb78   :  { %1100 = vmatpush.msrb.mxu2 %v1651_v0  ;;  %1158 = vmatpush.msrb.mxu3 %v1706_v33  ;;  %v110_v0 = vadd.f32 %v1694_v8, %v1844_v59 }
 0xb79   :  { %1185 = vmatpush.msra.mxu1 %v1746_v42 }
 0xb7a   :  { %1101 = vmatpush.msrb.mxu2 %v1656_v1  ;;  %1159 = vmatpush.msrb.mxu3 %v1711_v34 }
 0xb7b   :  { %1186 = vmatpush.msra.mxu1 %v1754_v43 }
 0xb7c   :  { %1102 = vmatpush.msrb.mxu2 %v1668_v4  ;;  %1160 = vmatpush.msrb.mxu3 %v1717_v35 }
 0xb7e   :  { %1103 = vmatpush.msrb.mxu2 %v1677_v6  ;;  %1161 = vmatpush.msrb.mxu3 %v1723_v36 }
 0xbf0   :  { %v894_v24 = vpop.f32.mrf.mxu1 }
 0xbfa   :  { %v811_v33 = vpop.f32.mrf.mxu2  ;;  %v869_v23 = vpop.f32.mrf.mxu3 }
 0xbfb   :  { %v814_v1 = vadd.f32 %v811_v33, %v110_v0  ;;  %v870_v34 = vadd.f32 %v1787_v50, %v869_v23 }
 0xbfd   :  { %1523 = vtanh.f32 %v814_v1  ;;  %v897_v25 = vadd.f32 %v894_v24, %v870_v34  ;;  %v1426_v6 = vmul.f32 -1.442695, %v814_v1 }
 0xbff   :  { %1525 = vtanh.f32 %v897_v25  ;;  %v1429_v36 = vmul.f32 -1.442695, %v897_v25 }
 0xc00   :  { %1527 = vpow2.f32 %v1426_v6 }
 0xc01   :  { %1529 = vpow2.f32 %v1429_v36 }
 0xc03   :  { %v1524_v4 = vpop.eup %1523 }
 0xc04   :  { %837 = vrot.lane.b32.xlu0 %v1524_v4, %s1586_s12 }
 0xc05   :  { %v1526_v35 = vpop.eup %1525 }
 0xc06   :  { %920 = vrot.lane.b32.xlu1 %v1526_v35, %s1586_s12  ;;  %v1528_v8 = vpop.eup %1527 }
 0xc07   :  { %v1530_v59 = vpop.eup %1529  ;;  %v818_v26 = vadd.f32 1.0, %v1528_v8 }
 0xc08   :  { %v901_v27 = vadd.f32 1.0, %v1530_v59 }
 0xc09   :  { %1531 = vrcp.f32 %v818_v26  ;;  %v830_v46 = vand.u32 2147483648, %v818_v26  ;;  %vm824_vm9 = vweird.f32 %v818_v26  ;;  %v828_v47 = vand.u32 2147483647, %v818_v26 }
 0xc0a   :  { %1533 = vrcp.f32 %v901_v27  ;;  %v913_v51 = vand.u32 2147483648, %v901_v27  ;;  %vm907_vm12 = vweird.f32 %v901_v27  ;;  %v911_v53 = vand.u32 2147483647, %v901_v27 }
 0xc0b   :  { %v831_v52 = vor.u32 1.1754944e-38, %v830_v46  ;;  %vm829_vm13 = vcmp.eq.f32.partialorder %v828_v47, 8.507059e+37 }
 0xc0c   :  { %v914_v3 = vor.u32 1.1754944e-38, %v913_v51  ;;  %vm912_vm15 = vcmp.eq.f32.partialorder %v911_v53, 8.507059e+37 }
 0xc0f   :  { %v1532_v58 = vpop.eup %1531 }
 0xc10   :  { %v1534_v28 = vpop.eup %1533  ;;  %v820_v30 = vmul.f32 %v1532_v58, %v818_v26  ;;  %vm825_vm8 = vweird.f32 %v1532_v58 }
 0xc11   :  { %v903_v32 = vmul.f32 %v1534_v28, %v901_v27  ;;  %vm826_vm10 = vmor %vm824_vm9, %vm825_vm8  ;;  %vm908_vm11 = vweird.f32 %v1534_v28 }
 0xc12   :  { %v821_v37 = vsub.f32 1.0, %v820_v30  ;;  %vm909_vm14 = vmor %vm907_vm12, %vm908_vm11 }
 0xc13   :  { %v904_v41 = vsub.f32 1.0, %v903_v32 }
 0xc14   :  { %v822_v44 = vmul.f32 %v1532_v58, %v821_v37 }
 0xc15   :  { %v905_v45 = vmul.f32 %v1534_v28, %v904_v41 }
 0xc16   :  { %v823_v31 = vadd.f32 %v1532_v58, %v822_v44 }
 0xc17   :  { %v906_v48 = vadd.f32 %v1534_v28, %v905_v45 }
 0xc18   :  { %v827_v49 = vsel %vm826_vm10, %v1532_v58, %v823_v31 }
 0xc19   :  { %v832_v56 = vsel %vm829_vm13, %v831_v52, %v827_v49  ;;  %v910_v62 = vsel %vm909_vm14, %v1534_v28, %v906_v48 }
 0xc1a   :  { %v915_v29 = vsel %vm912_vm15, %v914_v3, %v910_v62  ;;  %v835_v10 = vmul.f32 %v832_v56, %v1929_v17 }
 0xc1b   :  { %v918_v14 = vmul.f32 %v915_v29, %v1925_v15  ;;  %v1579_v15 = vld [vmem:[%s2115_s4 + $0x18] sm:$0xff] }
 0xc76   :  { %v838_v54 = vpop.permute.xlu0 %837 }
 0xc77   :  { %v840_v63 = vmul.f32 %v838_v54, %v832_v56 }
 0xc78   :  { %v921_v5 = vpop.permute.xlu1 %920 }
 0xc79   :  { %842 = vrot.lane.b32.xlu2 %v840_v63, %s1587_s13  ;;  %v923_v7 = vmul.f32 %v921_v5, %v915_v29 }
 0xc7b   :  { %925 = vrot.lane.b32.xlu0 %v923_v7, %s1587_s13 }
 0xcd3   :  { %v843_v38 = vpop.permute.xlu2 %842 }
 0xcd4   :  { %v1959_v12 = vadd.f32 %v843_v38, %v835_v10 }
 0xcd6   :  { %1535 = vtanh.f32 %v1959_v12 }
 0xcdc   :  { %v1536_v13 = vpop.eup %1535 }
 0xcdd   :  { %848 = vrot.lane.b32.xlu1 %v1536_v13, %s1586_s12 }
 0xced   :  { %v926_v55 = vpop.permute.xlu0 %925 }
 0xcee   :  { %v1964_v16 = vadd.f32 %v926_v55, %v918_v14 }
 0xcf0   :  { %1537 = vtanh.f32 %v1964_v16 }
 0xcf6   :  { %v1538_v2 = vpop.eup %1537 }
 0xcf7   :  { %931 = vrot.lane.b32.xlu2 %v1538_v2, %s1586_s12 }
 0xd4f   :  { %v849_v18 = vpop.permute.xlu1 %848 }
 0xd50   :  { %v851_v17 = vmul.f32 %v849_v18, %v832_v56 }
 0xd51   :  { %v932_v19 = vpop.permute.xlu2 %931 }
 0xd52   :  { %937 = vrot.lane.b32.xlu0 %v851_v17, %s1587_s13  ;;  %v934_v20 = vmul.f32 %v932_v19, %v915_v29 }
 0xd54   :  { %1020 = vrot.lane.b32.xlu1 %v934_v20, %s1587_s13 }
 0xdc4   :  { %v938_v11 = vpop.permute.xlu0 %937 }
 0xdc5   :  { %1430 = vmatmul.msk.f32.vlgmr.msra.gmra.mxu2 %vm140_vm5, %v938_v11  ;;  %1432 = vmatmul.msk.f32.vlgmr.msra.gmra.mxu3 %vm140_vm5, %v938_v11 }
 0xdc6   :  { %1271 = vmatpush.msra.mxu3 %v1731_v39  ;;  %1246 = vmatpush.msra.mxu2 %v1579_v15  ;;  %v1021_v21 = vpop.permute.xlu1 %1020  ;;  %v1581_v39 = vld [vmem:[%s2115_s4 + $0x8] sm:$0xff] }
 0xdc7   :  { %1433 = vmatmul.msk.f32.vlgmr.msrb.gmra.mxu1 %vm140_vm5, %v1021_v21  ;;  %v2022_v21 = vld [vmem:[%s2117_s6] ss:$0 sm:$0xff] }
 0xdc8   :  { %1272 = vmatpush.msra.mxu3 %v1736_v40  ;;  %1247 = vmatpush.msra.mxu2 %v1580_v22  ;;  %v1992_v40 = vld [vmem:[%s2114_s2] ss:$0 sm:$0xff] }
 0xdc9   :  { %v116_v17 = vadd.f32 %v1992_v40, %v1848_v61 }
 0xdca   :  { %1273 = vmatpush.msra.mxu3 %v1746_v42  ;;  %1248 = vmatpush.msra.mxu2 %v1581_v39  ;;  %v113_v42 = vadd.f32 %v1992_v40, %v1846_v60 }
 0xdcc   :  { %1274 = vmatpush.msra.mxu3 %v1754_v43  ;;  %1249 = vmatpush.msra.mxu2 %v1582_v9 }
 0xe44   :  { %v1041_v1 = vpop.f32.mrf.mxu1 }
 0xe48   :  { %v958_v57 = vpop.f32.mrf.mxu2  ;;  %v1016_v0 = vpop.f32.mrf.mxu3 }
 0xe49   :  { %v961_v33 = vadd.f32 %v958_v57, %v113_v42  ;;  %v1017_v23 = vadd.f32 %v1787_v50, %v1016_v0 }
 0xe4b   :  { %1539 = vtanh.f32 %v961_v33  ;;  %v1044_v43 = vadd.f32 %v1041_v1, %v1017_v23  ;;  %v1431_v25 = vmul.f32 -1.442695, %v961_v33 }
 0xe4d   :  { %1541 = vtanh.f32 %v1044_v43  ;;  %v1434_v36 = vmul.f32 -1.442695, %v1044_v43 }
 0xe4e   :  { %1543 = vpow2.f32 %v1431_v25 }
 0xe51   :  { %v1540_v34 = vpop.eup %1539 }
 0xe52   :  { %984 = vrot.lane.b32.xlu2 %v1540_v34, %s1586_s12 }
 0xe53   :  { %v1542_v24 = vpop.eup %1541 }
 0xe54   :  { %1067 = vrot.lane.b32.xlu0 %v1542_v24, %s1586_s12  ;;  %v1544_v4 = vpop.eup %1543 }
 0xe55   :  { %v965_v35 = vadd.f32 1.0, %v1544_v4 }
 0xe57   :  { %1545 = vrcp.f32 %v965_v35  ;;  %v977_v27 = vand.u32 2147483648, %v965_v35  ;;  %vm971_vm1 = vweird.f32 %v965_v35  ;;  %v975_v28 = vand.u32 2147483647, %v965_v35 }
 0xe58   :  { %1547 = vpow2.f32 %v1434_v36 }
 0xe59   :  { %v978_v32 = vor.u32 1.1754944e-38, %v977_v27  ;;  %vm976_vm3 = vcmp.eq.f32.partialorder %v975_v28, 8.507059e+37 }
 0xe5d   :  { %v1546_v60 = vpop.eup %1545 }
 0xe5e   :  { %v967_v6 = vmul.f32 %v1546_v60, %v965_v35  ;;  %v1548_v59 = vpop.eup %1547  ;;  %vm972_vm0 = vweird.f32 %v1546_v60 }
 0xe5f   :  { %v1048_v58 = vadd.f32 1.0, %v1548_v59  ;;  %vm973_vm2 = vmor %vm971_vm1, %vm972_vm0 }
 0xe60   :  { %v968_v8 = vsub.f32 1.0, %v967_v6 }
 0xe61   :  { %1549 = vrcp.f32 %v1048_v58  ;;  %v1060_v49 = vand.u32 2147483648, %v1048_v58  ;;  %vm1054_vm6 = vweird.f32 %v1048_v58  ;;  %v1058_v51 = vand.u32 2147483647, %v1048_v58 }
 0xe62   :  { %v969_v50 = vmul.f32 %v1546_v60, %v968_v8 }
 0xe63   :  { %v1061_v53 = vor.u32 1.1754944e-38, %v1060_v49  ;;  %vm1059_vm8 = vcmp.eq.f32.partialorder %v1058_v51, 8.507059e+37 }
 0xe64   :  { %v970_v26 = vadd.f32 %v1546_v60, %v969_v50 }
 0xe66   :  { %v974_v30 = vsel %vm973_vm2, %v1546_v60, %v970_v26 }
 0xe67   :  { %v979_v37 = vsel %vm976_vm3, %v978_v32, %v974_v30  ;;  %v1550_v45 = vpop.eup %1549 }
 0xe68   :  { %v1050_v31 = vmul.f32 %v1550_v45, %v1048_v58  ;;  %vm1055_vm4 = vweird.f32 %v1550_v45  ;;  %v982_v63 = vmul.f32 %v979_v37, %v1959_v12 }
 0xe69   :  { %vm1056_vm7 = vmor %vm1054_vm6, %vm1055_vm4 }
 0xe6a   :  { %v1051_v46 = vsub.f32 1.0, %v1050_v31 }
 0xe6c   :  { %v1052_v47 = vmul.f32 %v1550_v45, %v1051_v46 }
 0xe6e   :  { %v1053_v48 = vadd.f32 %v1550_v45, %v1052_v47 }
 0xe70   :  { %v1057_v52 = vsel %vm1056_vm7, %v1550_v45, %v1053_v48 }
 0xe71   :  { %v1062_v56 = vsel %vm1059_vm8, %v1061_v53, %v1057_v52 }
 0xe72   :  { %v1065_v29 = vmul.f32 %v1062_v56, %v1964_v16 }
 0xeac   :  { %v985_v41 = vpop.permute.xlu2 %984 }
 0xead   :  { %v987_v44 = vmul.f32 %v985_v41, %v979_v37 }
 0xeaf   :  { %989 = vrot.lane.b32.xlu1 %v987_v44, %s1587_s13 }
 0xec6   :  { %v1068_v54 = vpop.permute.xlu0 %1067 }
 0xec7   :  { %v1070_v62 = vmul.f32 %v1068_v54, %v1062_v56 }
 0xec9   :  { %1072 = vrot.lane.b32.xlu2 %v1070_v62, %s1587_s13 }
 0xf21   :  { %v990_v3 = vpop.permute.xlu1 %989 }
 0xf22   :  { %v2002_v5 = vadd.f32 %v990_v3, %v982_v63 }
 0xf23   :  { %v1073_v7 = vpop.permute.xlu2 %1072 }
 0xf24   :  { %1551 = vtanh.f32 %v2002_v5  ;;  %v2006_v10 = vadd.f32 %v1073_v7, %v1065_v29 }
 0xf26   :  { %1553 = vtanh.f32 %v2006_v10 }
 0xf2a   :  { %v1552_v38 = vpop.eup %1551 }
 0xf2b   :  { %995 = vrot.lane.b32.xlu0 %v1552_v38, %s1586_s12 }
 0xf2c   :  { %v1554_v13 = vpop.eup %1553 }
 0xf2d   :  { %1078 = vrot.lane.b32.xlu1 %v1554_v13, %s1586_s12 }
 0xf9d   :  { %v996_v14 = vpop.permute.xlu0 %995 }
 0xf9e   :  { %v998_v12 = vmul.f32 %v996_v14, %v979_v37 }
 0xf9f   :  { %v1079_v55 = vpop.permute.xlu1 %1078 }
 0xfa0   :  { %1084 = vrot.lane.b32.xlu2 %v998_v12, %s1587_s13  ;;  %v1081_v2 = vmul.f32 %v1079_v55, %v1062_v56 }
 0xfa2   :  { %1167 = vrot.lane.b32.xlu0 %v1081_v2, %s1587_s13 }
 0xffa   :  { %v1085_v16 = vpop.permute.xlu2 %1084 }
 0xffb   :  { %1435 = vmatmul.msk.f32.vlgmr.msrb.gmra.mxu2 %vm140_vm5, %v1085_v16  ;;  %1437 = vmatmul.msk.f32.vlgmr.msrb.gmra.mxu3 %vm140_vm5, %v1085_v16 }
0x1014   :  { %v1168_v18 = vpop.permute.xlu0 %1167 }
0x1015   :  { %1438 = vmatmul.msk.f32.vlgmr.msra.gmra.mxu1 %vm140_vm5, %v1168_v18 }
0x107e   :  { %v1105_v19 = vpop.f32.mrf.mxu2  ;;  %v1163_v15 = vpop.f32.mrf.mxu3 }
0x107f   :  { %v1108_v20 = vadd.f32 %v1105_v19, %v116_v17  ;;  %v1164_v22 = vadd.f32 %v2022_v21, %v1163_v15 }
0x1081   :  { %1555 = vtanh.f32 %v1108_v20  ;;  %v1436_v40 = vmul.f32 -1.442695, %v1108_v20 }
0x1087   :  { %v1556_v11 = vpop.eup %1555 }
0x1088   :  { %1131 = vrot.lane.b32.xlu1 %v1556_v11, %s1586_s12 }
0x1092   :  { %v1188_v39 = vpop.f32.mrf.mxu1 }
0x1093   :  { %v1191_v9 = vadd.f32 %v1188_v39, %v1164_v22 }
0x1095   :  { %1557 = vtanh.f32 %v1191_v9  ;;  %v1439_v61 = vmul.f32 -1.442695, %v1191_v9 }
0x1097   :  { %1559 = vpow2.f32 %v1439_v61 }
0x1098   :  { %1561 = vpow2.f32 %v1436_v40 }
0x109b   :  { %v1558_v42 = vpop.eup %1557 }
0x109c   :  { %1214 = vrot.lane.b32.xlu2 %v1558_v42, %s1586_s12 }
0x109d   :  { %v1560_v57 = vpop.eup %1559 }
0x109e   :  { %v1562_v0 = vpop.eup %1561  ;;  %v1195_v33 = vadd.f32 1.0, %v1560_v57 }
0x109f   :  { %v1112_v23 = vadd.f32 1.0, %v1562_v0 }
0x10a0   :  { %1563 = vrcp.f32 %v1195_v33  ;;  %v1207_v36 = vand.u32 2147483648, %v1195_v33  ;;  %vm1201_vm10 = vweird.f32 %v1195_v33  ;;  %v1205_v8 = vand.u32 2147483647, %v1195_v33 }
0x10a1   :  { %1565 = vrcp.f32 %v1112_v23  ;;  %v1124_v26 = vand.u32 2147483648, %v1112_v23  ;;  %vm1118_vm13 = vweird.f32 %v1112_v23  ;;  %v1122_v58 = vand.u32 2147483647, %v1112_v23 }
0x10a2   :  { %v1208_v27 = vor.u32 1.1754944e-38, %v1207_v36  ;;  %vm1206_vm14 = vcmp.eq.f32.partialorder %v1205_v8, 8.507059e+37  ;;  %v1361_v36 = vld [vmem:[%s2120_s9 + $0x50] sm:$0xff]  ;;  %v1360_v8 = vld [vmem:[%s2120_s9 + $0x48] sm:$0xff] }
0x10a3   :  { %v1125_v41 = vor.u32 1.1754944e-38, %v1124_v26  ;;  %vm1123_vm0 = vcmp.eq.f32.partialorder %v1122_v58, 8.507059e+37  ;;  %v1357_v26 = vld [vmem:[%s2120_s9 + $0x30] sm:$0xff]  ;;  %v1355_v58 = vld [vmem:[%s2120_s9 + $0x20] sm:$0xff] }
0x10a6   :  { %v1564_v1 = vpop.eup %1563 }
0x10a7   :  { %v1566_v43 = vpop.eup %1565  ;;  %v1197_v34 = vmul.f32 %v1564_v1, %v1195_v33  ;;  %vm1202_vm9 = vweird.f32 %v1564_v1  ;;  %v1320_v33 = vld [vmem:[%s2118_s7 + $0x18] sm:$0xff] }
0x10a8   :  { %v1114_v24 = vmul.f32 %v1566_v43, %v1112_v23  ;;  %vm1203_vm11 = vmor %vm1201_vm10, %vm1202_vm9  ;;  %vm1119_vm12 = vweird.f32 %v1566_v43  ;;  %v1319_v23 = vld [vmem:[%s2118_s7 + $0x10] sm:$0xff]  ;;  %1342 = vmatpush.msra.mxu0 %v1320_v33 }
0x10a9   :  { %v1198_v25 = vsub.f32 1.0, %v1197_v34  ;;  %vm1120_vm15 = vmor %vm1118_vm13, %vm1119_vm12 }
0x10aa   :  { %v1115_v4 = vsub.f32 1.0, %v1114_v24  ;;  %1343 = vmatpush.msra.mxu0 %v1319_v23 }
0x10ab   :  { %v1199_v35 = vmul.f32 %v1564_v1, %v1198_v25  ;;  %v1366_v25 = vld [vmem:[%s2120_s9 + $0x78] sm:$0xff] }
0x10ac   :  { %v1116_v60 = vmul.f32 %v1566_v43, %v1115_v4  ;;  %v1365_v4 = vld [vmem:[%s2120_s9 + $0x70] sm:$0xff]  ;;  %1371 = vmatpush.msrb.mxu1 %v1366_v25 }
0x10ad   :  { %v1200_v6 = vadd.f32 %v1564_v1, %v1199_v35  ;;  %v1364_v35 = vld [vmem:[%s2120_s9 + $0x68] sm:$0xff] }
0x10ae   :  { %v1117_v50 = vadd.f32 %v1566_v43, %v1116_v60  ;;  %1372 = vmatpush.msrb.mxu1 %v1365_v4  ;;  %v1363_v60 = vld [vmem:[%s2120_s9 + $0x60] sm:$0xff] }
0x10af   :  { %v1204_v59 = vsel %vm1203_vm11, %v1564_v1, %v1200_v6  ;;  %v1318_v1 = vld [vmem:[%s2118_s7 + $0x8] sm:$0xff]  ;;  %v1362_v6 = vld [vmem:[%s2120_s9 + $0x58] sm:$0xff] }
0x10b0   :  { %v1209_v30 = vsel %vm1206_vm14, %v1208_v27, %v1204_v59  ;;  %v1121_v32 = vsel %vm1120_vm15, %v1566_v43, %v1117_v50  ;;  %v1317_v43 = vld [vmem:[%s2118_s7] sm:$0xff]  ;;  %1344 = vmatpush.msra.mxu0 %v1318_v1  ;;  %1373 = vmatpush.msrb.mxu1 %v1364_v35  ;;  %v1358_v59 = vld [vmem:[%s2120_s9 + $0x38] sm:$0xff]  ;;  %v1356_v27 = vld [vmem:[%s2120_s9 + $0x28] sm:$0xff] }
0x10b1   :  { %v1126_v45 = vsel %vm1123_vm0, %v1125_v41, %v1121_v32  ;;  %v1212_v46 = vmul.f32 %v1209_v30, %v2006_v10  ;;  %v1359_v50 = vld [vmem:[%s2120_s9 + $0x40] sm:$0xff]  ;;  %v1353_v32 = vld [vmem:[%s2120_s9 + $0x10] sm:$0xff] }
0x10b2   :  { %v1129_v49 = vmul.f32 %v1126_v45, %v2002_v5  ;;  %1345 = vmatpush.msra.mxu0 %v1317_v43  ;;  %1374 = vmatpush.msrb.mxu1 %v1363_v60  ;;  %v1351_v41 = vld [vmem:[%s2120_s9] sm:$0xff] }
0x10b4   :  { %1375 = vmatpush.msrb.mxu1 %v1362_v6 }
0x10b6   :  { %1376 = vmatpush.msrb.mxu1 %v1361_v36 }
0x10b8   :  { %1377 = vmatpush.msrb.mxu1 %v1360_v8 }
0x10ba   :  { %1378 = vmatpush.msrb.mxu1 %v1359_v50 }
0x10bc   :  { %1379 = vmatpush.msrb.mxu1 %v1358_v59 }
0x10be   :  { %1380 = vmatpush.msrb.mxu1 %v1357_v26 }
0x10c0   :  { %1381 = vmatpush.msrb.mxu1 %v1356_v27 }
0x10c2   :  { %1382 = vmatpush.msrb.mxu1 %v1355_v58 }
0x10f6   :  { %v1215_v28 = vpop.permute.xlu2 %1214 }
0x10f7   :  { %v1217_v37 = vmul.f32 %v1215_v28, %v1209_v30  ;;  %v1354_v28 = vld [vmem:[%s2120_s9 + $0x18] sm:$0xff] }
0x10f8   :  { %1383 = vmatpush.msrb.mxu1 %v1354_v28 }
0x10f9   :  { %1219 = vrot.lane.b32.xlu1 %v1217_v37, %s1587_s13  ;;  %v1352_v37 = vld [vmem:[%s2120_s9 + $0x8] sm:$0xff] }
0x10fa   :  { %v1132_v44 = vpop.permute.xlu1 %1131  ;;  %1384 = vmatpush.msrb.mxu1 %v1353_v32 }
0x10fb   :  { %v1134_v31 = vmul.f32 %v1132_v44, %v1126_v45  ;;  %v1449_v44 = vld [vmem:[%s2119_s8] ss:$0 sm:$0xff] }
0x10fc   :  { %1385 = vmatpush.msrb.mxu1 %v1352_v37 }
0x10fd   :  { %1136 = vrot.lane.b32.xlu0 %v1134_v31, %s1587_s13 }
0x10fe   :  { %1386 = vmatpush.msrb.mxu1 %v1351_v41 }
0x116b   :  { %v1220_v47 = vpop.permute.xlu1 %1219 }
0x116c   :  { %v1222_v48 = vadd.f32 %v1220_v47, %v1212_v46  ;;  %v1450_v47 = vld [vmem:[%s2121_s10] ss:$0 sm:$0xff] }
0x116e   :  { %1567 = vtanh.f32 %v1222_v48 }
0x116f   :  { %v1137_v51 = vpop.permute.xlu0 %1136 }
0x1170   :  { %v1139_v52 = vadd.f32 %v1137_v51, %v1129_v49 }
0x1172   :  { %1569 = vtanh.f32 %v1139_v52 }
0x1174   :  { %v1568_v53 = vpop.eup %1567 }
0x1175   :  { %1225 = vrot.lane.b32.xlu0 %v1568_v53, %s1586_s12 }
0x1178   :  { %v1570_v54 = vpop.eup %1569 }
0x1179   :  { %1142 = vrot.lane.b32.xlu2 %v1570_v54, %s1586_s12 }
0x11d3   :  { %v1143_v56 = vpop.permute.xlu2 %1142 }
0x11d4   :  { %v1145_v62 = vmul.f32 %v1143_v56, %v1126_v45 }
0x11d6   :  { %1230 = vrot.lane.b32.xlu1 %v1145_v62, %s1587_s13 }
0x11e7   :  { %v1226_v63 = vpop.permute.xlu0 %1225 }
0x11e8   :  { %v1228_v3 = vmul.f32 %v1226_v63, %v1209_v30 }
0x11ea   :  { %1255 = vrot.lane.b32.xlu2 %v1228_v3, %s1587_s13 }
0x1244   :  { %v1256_v29 = vpop.permute.xlu2 %1255 }
0x1245   :  { %1441 = vmatmul.msk.f32.vlgmr.msra.gmra.mxu3 %vm140_vm5, %v1256_v29 }
0x1248   :  { %v1231_v5 = vpop.permute.xlu1 %1230 }
0x1249   :  { %1440 = vmatmul.msk.f32.vlgmr.msra.gmra.mxu2 %vm140_vm5, %v1231_v5 }
0x12c8   :  { %v1276_v38 = vpop.f32.mrf.mxu3 }
0x12cc   :  { %v1251_v7 = vpop.f32.mrf.mxu2 }
0x12cd   :  { %v1252_v10 = vadd.f32 %v2022_v21, %v1251_v7 }
0x12cf   :  { %v1279_v13 = vadd.f32 %v1276_v38, %v1252_v10 }
0x12d1   :  { %1571 = vtanh.f32 %v1279_v13  ;;  %v1442_v12 = vmul.f32 -1.442695, %v1279_v13 }
0x12d3   :  { %1573 = vpow2.f32 %v1442_v12 }
0x12d7   :  { %v1572_v14 = vpop.eup %1571 }
0x12d8   :  { %1302 = vrot.lane.b32.xlu0 %v1572_v14, %s1586_s12 }
0x12d9   :  { %v1574_v55 = vpop.eup %1573 }
0x12da   :  { %v1283_v2 = vadd.f32 1.0, %v1574_v55 }
0x12dc   :  { %1575 = vrcp.f32 %v1283_v2  ;;  %v1295_v11 = vand.u32 2147483648, %v1283_v2  ;;  %vm1289_vm2 = vweird.f32 %v1283_v2  ;;  %v1293_v15 = vand.u32 2147483647, %v1283_v2 }
0x12de   :  { %v1296_v22 = vor.u32 1.1754944e-38, %v1295_v11  ;;  %vm1294_vm4 = vcmp.eq.f32.partialorder %v1293_v15, 8.507059e+37 }
0x12e2   :  { %v1576_v16 = vpop.eup %1575 }
0x12e3   :  { %v1285_v18 = vmul.f32 %v1576_v16, %v1283_v2  ;;  %vm1290_vm1 = vweird.f32 %v1576_v16 }
0x12e4   :  { %vm1291_vm3 = vmor %vm1289_vm2, %vm1290_vm1 }
0x12e5   :  { %v1286_v17 = vsub.f32 1.0, %v1285_v18 }
0x12e7   :  { %v1287_v19 = vmul.f32 %v1576_v16, %v1286_v17 }
0x12e9   :  { %v1288_v20 = vadd.f32 %v1576_v16, %v1287_v19 }
0x12eb   :  { %v1292_v21 = vsel %vm1291_vm3, %v1576_v16, %v1288_v20 }
0x12ec   :  { %v1297_v9 = vsel %vm1294_vm4, %v1296_v22, %v1292_v21 }
0x12ed   :  { %v1300_v61 = vmul.f32 %v1297_v9, %v1222_v48 }
0x134a   :  { %v1303_v39 = vpop.permute.xlu0 %1302 }
0x134b   :  { %v1305_v42 = vmul.f32 %v1303_v39, %v1297_v9 }
0x134d   :  { %1307 = vrot.lane.b32.xlu1 %v1305_v42, %s1587_s13 }
0x13bf   :  { %v1308_v40 = vpop.permute.xlu1 %1307 }
0x13c0   :  { %v1310_v57 = vadd.f32 %v1308_v40, %v1300_v61 }
0x13c2   :  { %1577 = vtanh.f32 %v1310_v57 }
0x13c8   :  { %v1578_v0 = vpop.eup %1577 }
0x13c9   :  { %1313 = vrot.lane.b32.xlu2 %v1578_v0, %s1586_s12 }
0x1423   :  { %v1314_v34 = vpop.permute.xlu2 %1313 }
0x1424   :  { %v1316_v24 = vmul.f32 %v1314_v34, %v1297_v9 }
0x1426   :  { %1326 = vrot.lane.b32.xlu0 %v1316_v24, %s1587_s13 }
0x1498   :  { %v1327_v30 = vpop.permute.xlu0 %1326 }
0x1499   :  { %1443 = vmatmul.msk.f32.vlgmr.msra.gmra.mxu0 %vm140_vm5, %v1327_v30  ;;  %vm1391_vm5 = vcmask 64512  }
0x1516   :  { %v1347_v45 = vpop.f32.mrf.mxu0 }
0x1517   :  { %v1348_v31 = vadd.f32 %v1449_v44, %v1347_v45 }
0x1519   :  { %v1350_v46 = vmax.f32 %v1348_v31, 0.0 }
0x151b   :  { %1387 = vmatmul.f32.vlgmr.msrb.gmra.mxu1 %v1350_v46 }
0x1598   :  { %v1388_v48 = vpop.f32.mrf.mxu1 }
0x1599   :  { %v1389_v49 = vadd.f32 %v1450_v47, %v1388_v48 }
0x159b   :  { %1392 = vst.msk [vmem:[%s2122_s11] sm:$0xff] %vm1391_vm5, %v1389_v49 }

</bundles_post_ra>
